<compile_context>
chip_gen: v5e
topology: v5e:2x2
jax: 0.10.0
libtpu: 0.0.40
codegen_flags: <defaults>
</compile_context>

<pallas_src>
import jax
import jax.numpy as jnp
from jax.experimental import pallas as pl
from jax.experimental.pallas import tpu as pltpu

# ------------------------- small-BERT configuration -------------------------
VOCAB = 100
MAX_POS = 32
TYPE_VOCAB = 2
HIDDEN = 32          # "768" in bert-base, scaled down
N_HEADS = 4
HEAD_DIM = HIDDEN // N_HEADS
INTERMEDIATE = 64
N_LAYERS = 2
NUM_CLASSES = 3
LN_EPS = 1e-12       # BERT LayerNorm eps

# lane-dense padded feature sizes (multiples of 128)
HP = 128             # padded hidden
IP = 128             # padded intermediate
CP = 128             # padded classifier output


# ------------------------------ fused Pallas kernel --------------------------
def _bert_fused_kernel(emb_ref, mask_ref, sbias_ref, eg_ref, eb_ref,
                       qkv_w_ref, qkv_b_ref, o_w_ref, o_b_ref,
                       ln1_g_ref, ln1_b_ref, i_w_ref, i_b_ref,
                       f_w_ref, f_b_ref, ln2_g_ref, ln2_b_ref,
                       cls_w_ref, cls_b_ref, out_ref):
    """One grid step = one block of sequences stacked as R rows ([R, HP])."""
    f32, bf16 = jnp.float32, jnp.bfloat16
    R = emb_ref.shape[0]
    inv_h = 1.0 / HIDDEN
    scale = 1.0 / (HEAD_DIM ** 0.5)

    # --- constants (hoisted out of the layer/head loops) ---
    lane = jax.lax.broadcasted_iota(jnp.int32, (1, HP), 1)
    feat_mask = (lane < HIDDEN).astype(f32)                       # real-feature lanes
    head_masks = [((lane >= h * HEAD_DIM) & (lane < (h + 1) * HEAD_DIM)).astype(f32)
                  for h in range(N_HEADS)]
    q_masks = [m * scale for m in head_masks]                     # fold 1/sqrt(Dh) into Q mask

    # attention bias: block-diagonal (per-sequence) structure + key-padding mask.
    # -1e9 off the diagonal blocks keeps softmax strictly per-sequence.
    bias = sbias_ref[...] + (1.0 - mask_ref[0]) * -10000.0        # [R, R]

    def layer_norm(h, g, b):
        # Statistics over the real HIDDEN features only; pad lanes hold zeros
        # on entry, so the unmasked sum already equals the real-feature sum.
        mu = jnp.sum(h, axis=-1, keepdims=True) * inv_h
        c = (h - mu) * feat_mask
        var = jnp.sum(c * c, axis=-1, keepdims=True) * inv_h
        return c * jax.lax.rsqrt(var + LN_EPS) * g + b

    # embeddings LayerNorm (no residual)
    x = layer_norm(emb_ref[...], eg_ref[...], eb_ref[...])        # [R, HP] f32

    for l in range(N_LAYERS):                                     # unrolled
        # ---- self-attention: fused QKV projection (one [R,HP]@[HP,3HP]) ----
        qkv = (jnp.dot(x.astype(bf16), qkv_w_ref[l],
                       preferred_element_type=f32) + qkv_b_ref[l])       # [R, 3HP]
        # 128-lane-aligned slabs (vreg-aligned, hoisted out of the head loop)
        q_all = qkv[:, :HP]
        k_bf = qkv[:, HP:2 * HP].astype(bf16)
        v_bf = qkv[:, 2 * HP:3 * HP].astype(bf16)

        ctx = jnp.zeros((R, HP), f32)
        for h in range(N_HEADS):                                  # unrolled
            # per-head extraction = multiply by constant lane mask (no lane slicing)
            q_h = (q_all * q_masks[h]).astype(bf16)               # [R, HP]
            s = jax.lax.dot_general(q_h, k_bf, (((1,), (1,)), ((), ())),
                                    preferred_element_type=f32)   # q_h @ k^T  [R, R]
            s = s + bias
            s = s - jnp.max(s, axis=-1, keepdims=True)            # stable softmax
            p = jnp.exp(s)
            p = p * pl.reciprocal(jnp.sum(p, axis=-1, keepdims=True), approx=True)
            # context lands in this head's lanes only; merge by masked add
            ctx = ctx + jnp.dot(p.astype(bf16), v_bf,
                                preferred_element_type=f32) * head_masks[h]
        # single output projection for all heads
        attn = jnp.dot(ctx.astype(bf16), o_w_ref[l],
                       preferred_element_type=f32) + o_b_ref[l]
        x = layer_norm(attn + x, ln1_g_ref[l], ln1_b_ref[l])

        # ---- feed-forward ----
        inter = (jnp.dot(x.astype(bf16), i_w_ref[l],
                         preferred_element_type=f32) + i_b_ref[l])
        # TODO(synk): HF BERT uses erf-based GELU; tanh approximation used here
        # for guaranteed Mosaic lowering (~1e-3 elementwise deviation).
        inter = jax.nn.gelu(inter, approximate=True)
        ffn = jnp.dot(inter.astype(bf16), f_w_ref[l],
                      preferred_element_type=f32) + f_b_ref[l]
        x = layer_norm(ffn + x, ln2_g_ref[l], ln2_b_ref[l])

    # ---- classifier: dense [R, CP] store; CLS rows picked out in the wrapper ----
    logits = jnp.dot(x.astype(bf16), cls_w_ref[...],
                     preferred_element_type=f32) + cls_b_ref[...]
    out_ref[...] = logits.astype(out_ref.dtype)


# --------------------------- parameter construction --------------------------
def init_params(key):
    keys = iter(jax.random.split(key, 64))
    std = 0.02

    def w(shape):
        return std * jax.random.normal(next(keys), shape, jnp.float32)

    def pad2(m, rows, cols):
        out = jnp.zeros((rows, cols), jnp.float32)
        return out.at[: m.shape[0], : m.shape[1]].set(m)

    # embedding tables padded on the feature axis (pad lanes stay exactly zero)
    word = pad2(w((VOCAB, HIDDEN)), VOCAB, HP)
    pos = pad2(w((MAX_POS, HIDDEN)), MAX_POS, HP)
    typ = pad2(w((TYPE_VOCAB, HIDDEN)), TYPE_VOCAB, HP)

    layers = {k: [] for k in ("qkv_w", "qkv_b", "o_w", "o_b", "ln1_g", "ln1_b",
                              "i_w", "i_b", "f_w", "f_b", "ln2_g", "ln2_b")}
    for _ in range(N_LAYERS):
        qkv_w = jnp.zeros((HP, 3 * HP), jnp.float32)
        qkv_b = jnp.zeros((1, 3 * HP), jnp.float32)
        for s in range(3):                                  # Q | K | V slots of 128 lanes
            qkv_w = qkv_w.at[:HIDDEN, s * HP:s * HP + HIDDEN].set(w((HIDDEN, HIDDEN)))
            qkv_b = qkv_b.at[:, s * HP:s * HP + HIDDEN].set(w((1, HIDDEN)))
        layers["qkv_w"].append(qkv_w)
        layers["qkv_b"].append(qkv_b)
        layers["o_w"].append(pad2(w((HIDDEN, HIDDEN)), HP, HP))
        layers["o_b"].append(pad2(w((1, HIDDEN)), 1, HP))
        layers["ln1_g"].append(pad2(jnp.ones((1, HIDDEN), jnp.float32), 1, HP))
        layers["ln1_b"].append(pad2(w((1, HIDDEN)), 1, HP))
        layers["i_w"].append(pad2(w((HIDDEN, INTERMEDIATE)), HP, IP))
        layers["i_b"].append(pad2(w((1, INTERMEDIATE)), 1, IP))
        layers["f_w"].append(pad2(w((INTERMEDIATE, HIDDEN)), IP, HP))
        layers["f_b"].append(pad2(w((1, HIDDEN)), 1, HP))
        layers["ln2_g"].append(pad2(jnp.ones((1, HIDDEN), jnp.float32), 1, HP))
        layers["ln2_b"].append(pad2(w((1, HIDDEN)), 1, HP))
    layers = {k: jnp.stack(v) for k, v in layers.items()}   # leading layer axis
    # bf16 storage for the dense matmul weights (MXU-native; halves DMA/VMEM bytes)
    for k in ("qkv_w", "o_w", "i_w", "f_w"):
        layers[k] = layers[k].astype(jnp.bfloat16)

    return {
        "word_emb": word, "pos_emb": pos, "type_emb": typ,
        "emb_ln_g": pad2(jnp.ones((1, HIDDEN), jnp.float32), 1, HP),
        "emb_ln_b": pad2(w((1, HIDDEN)), 1, HP),
        "layers": layers,
        "cls_w": pad2(w((HIDDEN, NUM_CLASSES)), HP, CP).astype(jnp.bfloat16),
        "cls_b": pad2(w((1, NUM_CLASSES)), 1, CP),
    }


# ------------------------------ forward pass ---------------------------------
def _pick_batch_block(batch, seq, target_rows=128):
    """Largest divisor of `batch` whose row count fits target_rows, preferring
    choices that leave >= 2 grid steps (v7x: one per TensorCore)."""
    divisors = [d for d in range(1, batch + 1) if batch % d == 0]
    fit = [d for d in divisors if d * seq <= target_rows] or [1]
    two_step = [d for d in fit if batch // d >= 2]
    return max(two_step) if two_step else max(fit)


def bert_classifier_forward(params, input_ids, attention_mask):
    B, S = input_ids.shape
    assert S % 8 == 0, "seq_len must be a multiple of 8 (sublane alignment)"
    assert S <= MAX_POS, "seq_len exceeds the position-embedding table"
    L = params["layers"]

    b_blk = _pick_batch_block(B, S)          # sequences per grid step
    nb = B // b_blk                          # grid steps
    R = b_blk * S                            # stacked rows per step

    # TODO(synk): data-dependent embedding gather stays in plain JAX; the result
    # is already zero-padded on the lane axis because the tables are padded.
    emb = (params["word_emb"][input_ids]
           + params["pos_emb"][:S][None, :, :]
           + params["type_emb"][0][None, None, :]).astype(jnp.float32)   # [B, S, HP]
    emb2d = emb.reshape(B * S, HP)                                       # [B*S, HP]

    # raw key mask per block (bias is built inside the kernel; no [B,S,S] tensor)
    mask = attention_mask.astype(jnp.float32).reshape(nb, 1, R)

    # block-diagonal structural bias (same for every grid step; kept resident)
    pos_idx = jnp.arange(R)
    same_seq = (pos_idx[:, None] // S) == (pos_idx[None, :] // S)
    struct_bias = jnp.where(same_seq, 0.0, -1.0e9).astype(jnp.float32)   # [R, R]

    operands = [emb2d, mask, struct_bias, params["emb_ln_g"], params["emb_ln_b"],
                L["qkv_w"], L["qkv_b"], L["o_w"], L["o_b"],
                L["ln1_g"], L["ln1_b"], L["i_w"], L["i_b"],
                L["f_w"], L["f_b"], L["ln2_g"], L["ln2_b"],
                params["cls_w"], params["cls_b"]]

    def _weight_spec(arr):            # full array, same block every step (resident)
        nd = arr.ndim
        return pl.BlockSpec(arr.shape, lambda b, _nd=nd: (0,) * _nd)

    in_specs = ([pl.BlockSpec((R, HP), lambda b: (b, 0)),          # stacked rows
                 pl.BlockSpec((1, 1, R), lambda b: (b, 0, 0))]     # per-block key mask
                + [_weight_spec(a) for a in operands[2:]])

    logits_all = pl.pallas_call(
        _bert_fused_kernel,
        grid=(nb,),
        in_specs=in_specs,
        out_specs=pl.BlockSpec((R, CP), lambda b: (b, 0)),
        out_shape=jax.ShapeDtypeStruct((B * S, CP), jnp.float32),
        compiler_params=pltpu.CompilerParams(
            dimension_semantics=("parallel",),   # v7x: split batch blocks across 2 TCs
        ),
    )(*operands)

    # pick the [CLS] row of every sequence and strip lane padding
    return logits_all.reshape(B, S, CP)[:, 0, :NUM_CLASSES]


# ----------------------------------- main -------------------------------------
if __name__ == "__main__":
    key = jax.random.PRNGKey(0)
    pkey, ikey = jax.random.split(key)
    params = init_params(pkey)

    B, S = 2, 8
    input_ids = jax.random.randint(ikey, (B, S), 0, VOCAB, dtype=jnp.int32)
    # second sequence has two padding positions masked out
    attention_mask = jnp.ones((B, S), jnp.int32).at[1, 6:].set(0)

    logits = bert_classifier_forward(params, input_ids, attention_mask)
    jax.block_until_ready(logits)
    assert logits.shape == (B, NUM_CLASSES), logits.shape
    print("KERNEL_OK")
</pallas_src>

<mosaic_0001>
module attributes {stable_mosaic.version = 11 : i64} {
  func.func @_bert_fused_kernel(%arg0: i32, %arg1: memref<8x128xf32, #tpu.memory_space<vmem>>, %arg2: memref<1x1x8xf32, #tpu.memory_space<vmem>>, %arg3: memref<8x8xf32, #tpu.memory_space<vmem>>, %arg4: memref<1x128xf32, #tpu.memory_space<vmem>>, %arg5: memref<1x128xf32, #tpu.memory_space<vmem>>, %arg6: memref<2x128x384xbf16, #tpu.memory_space<vmem>>, %arg7: memref<2x1x384xf32, #tpu.memory_space<vmem>>, %arg8: memref<2x128x128xbf16, #tpu.memory_space<vmem>>, %arg9: memref<2x1x128xf32, #tpu.memory_space<vmem>>, %arg10: memref<2x1x128xf32, #tpu.memory_space<vmem>>, %arg11: memref<2x1x128xf32, #tpu.memory_space<vmem>>, %arg12: memref<2x128x128xbf16, #tpu.memory_space<vmem>>, %arg13: memref<2x1x128xf32, #tpu.memory_space<vmem>>, %arg14: memref<2x128x128xbf16, #tpu.memory_space<vmem>>, %arg15: memref<2x1x128xf32, #tpu.memory_space<vmem>>, %arg16: memref<2x1x128xf32, #tpu.memory_space<vmem>>, %arg17: memref<2x1x128xf32, #tpu.memory_space<vmem>>, %arg18: memref<128x128xbf16, #tpu.memory_space<vmem>>, %arg19: memref<1x128xf32, #tpu.memory_space<vmem>>, %arg20: memref<8x128xf32, #tpu.memory_space<vmem>>) attributes {dimension_semantics = [#tpu.dimension_semantics<parallel>], iteration_bounds = array<i64: 2>, scalar_prefetch = 0 : i64, scratch_operands = 0 : i64, tpu.core_type = #tpu.core_type<tc>, window_params = [{transform_indices = @transform_0, window_bounds = array<i64: 8, 128>}, {transform_indices = @transform_1, window_bounds = array<i64: 1, 1, 8>}, {pipeline_mode = #tpu.pipeline_mode<synchronous>, transform_indices = @transform_2, window_bounds = array<i64: 8, 8>}, {pipeline_mode = #tpu.pipeline_mode<synchronous>, transform_indices = @transform_3, window_bounds = array<i64: 1, 128>}, {pipeline_mode = #tpu.pipeline_mode<synchronous>, transform_indices = @transform_4, window_bounds = array<i64: 1, 128>}, {pipeline_mode = #tpu.pipeline_mode<synchronous>, transform_indices = @transform_5, window_bounds = array<i64: 2, 128, 384>}, {pipeline_mode = #tpu.pipeline_mode<synchronous>, transform_indices = @transform_6, window_bounds = array<i64: 2, 1, 384>}, {pipeline_mode = #tpu.pipeline_mode<synchronous>, transform_indices = @transform_7, window_bounds = array<i64: 2, 128, 128>}, {pipeline_mode = #tpu.pipeline_mode<synchronous>, transform_indices = @transform_8, window_bounds = array<i64: 2, 1, 128>}, {pipeline_mode = #tpu.pipeline_mode<synchronous>, transform_indices = @transform_9, window_bounds = array<i64: 2, 1, 128>}, {pipeline_mode = #tpu.pipeline_mode<synchronous>, transform_indices = @transform_10, window_bounds = array<i64: 2, 1, 128>}, {pipeline_mode = #tpu.pipeline_mode<synchronous>, transform_indices = @transform_11, window_bounds = array<i64: 2, 128, 128>}, {pipeline_mode = #tpu.pipeline_mode<synchronous>, transform_indices = @transform_12, window_bounds = array<i64: 2, 1, 128>}, {pipeline_mode = #tpu.pipeline_mode<synchronous>, transform_indices = @transform_13, window_bounds = array<i64: 2, 128, 128>}, {pipeline_mode = #tpu.pipeline_mode<synchronous>, transform_indices = @transform_14, window_bounds = array<i64: 2, 1, 128>}, {pipeline_mode = #tpu.pipeline_mode<synchronous>, transform_indices = @transform_15, window_bounds = array<i64: 2, 1, 128>}, {pipeline_mode = #tpu.pipeline_mode<synchronous>, transform_indices = @transform_16, window_bounds = array<i64: 2, 1, 128>}, {pipeline_mode = #tpu.pipeline_mode<synchronous>, transform_indices = @transform_17, window_bounds = array<i64: 128, 128>}, {pipeline_mode = #tpu.pipeline_mode<synchronous>, transform_indices = @transform_18, window_bounds = array<i64: 1, 128>}, {transform_indices = @transform_19, window_bounds = array<i64: 8, 128>}]} {
    %0 = tpu.iota {dimensions = array<i32: 1>} : vector<1x128xi32>
    %c32_i32 = arith.constant 32 : i32
    %1 = vector.broadcast %c32_i32 : i32 to vector<1x128xi32>
    %2 = arith.cmpi slt, %0, %1 : vector<1x128xi32>
    %3 = arith.extui %2 : vector<1x128xi1> to vector<1x128xi32>
    %4 = arith.sitofp %3 : vector<1x128xi32> to vector<1x128xf32>
    %c0_i32 = arith.constant 0 : i32
    %5 = vector.broadcast %c0_i32 : i32 to vector<1x128xi32>
    %6 = arith.cmpi sge, %0, %5 : vector<1x128xi32>
    %c8_i32 = arith.constant 8 : i32
    %7 = vector.broadcast %c8_i32 : i32 to vector<1x128xi32>
    %8 = arith.cmpi slt, %0, %7 : vector<1x128xi32>
    %9 = arith.andi %6, %8 : vector<1x128xi1>
    %10 = arith.extui %9 : vector<1x128xi1> to vector<1x128xi32>
    %11 = arith.sitofp %10 : vector<1x128xi32> to vector<1x128xf32>
    %c8_i32_0 = arith.constant 8 : i32
    %12 = vector.broadcast %c8_i32_0 : i32 to vector<1x128xi32>
    %13 = arith.cmpi sge, %0, %12 : vector<1x128xi32>
    %c16_i32 = arith.constant 16 : i32
    %14 = vector.broadcast %c16_i32 : i32 to vector<1x128xi32>
    %15 = arith.cmpi slt, %0, %14 : vector<1x128xi32>
    %16 = arith.andi %13, %15 : vector<1x128xi1>
    %17 = arith.extui %16 : vector<1x128xi1> to vector<1x128xi32>
    %18 = arith.sitofp %17 : vector<1x128xi32> to vector<1x128xf32>
    %c16_i32_1 = arith.constant 16 : i32
    %19 = vector.broadcast %c16_i32_1 : i32 to vector<1x128xi32>
    %20 = arith.cmpi sge, %0, %19 : vector<1x128xi32>
    %c24_i32 = arith.constant 24 : i32
    %21 = vector.broadcast %c24_i32 : i32 to vector<1x128xi32>
    %22 = arith.cmpi slt, %0, %21 : vector<1x128xi32>
    %23 = arith.andi %20, %22 : vector<1x128xi1>
    %24 = arith.extui %23 : vector<1x128xi1> to vector<1x128xi32>
    %25 = arith.sitofp %24 : vector<1x128xi32> to vector<1x128xf32>
    %c24_i32_2 = arith.constant 24 : i32
    %26 = vector.broadcast %c24_i32_2 : i32 to vector<1x128xi32>
    %27 = arith.cmpi sge, %0, %26 : vector<1x128xi32>
    %c32_i32_3 = arith.constant 32 : i32
    %28 = vector.broadcast %c32_i32_3 : i32 to vector<1x128xi32>
    %29 = arith.cmpi slt, %0, %28 : vector<1x128xi32>
    %30 = arith.andi %27, %29 : vector<1x128xi1>
    %31 = arith.extui %30 : vector<1x128xi1> to vector<1x128xi32>
    %32 = arith.sitofp %31 : vector<1x128xi32> to vector<1x128xf32>
    %cst = arith.constant 0.353553385 : f32
    %33 = vector.broadcast %cst : f32 to vector<1x128xf32>
    %34 = arith.mulf %11, %33 : vector<1x128xf32>
    %cst_4 = arith.constant 0.353553385 : f32
    %35 = vector.broadcast %cst_4 : f32 to vector<1x128xf32>
    %36 = arith.mulf %18, %35 : vector<1x128xf32>
    %cst_5 = arith.constant 0.353553385 : f32
    %37 = vector.broadcast %cst_5 : f32 to vector<1x128xf32>
    %38 = arith.mulf %25, %37 : vector<1x128xf32>
    %cst_6 = arith.constant 0.353553385 : f32
    %39 = vector.broadcast %cst_6 : f32 to vector<1x128xf32>
    %40 = arith.mulf %32, %39 : vector<1x128xf32>
    %c0 = arith.constant 0 : index
    %c0_7 = arith.constant 0 : index
    %41 = vector.load %arg3[%c0, %c0_7] : memref<8x8xf32, #tpu.memory_space<vmem>>, vector<8x8xf32>
    %c0_8 = arith.constant 0 : index
    %c0_9 = arith.constant 0 : index
    %c0_10 = arith.constant 0 : index
    %42 = vector.load %arg2[%c0_8, %c0_9, %c0_10] : memref<1x1x8xf32, #tpu.memory_space<vmem>>, vector<1x1x8xf32>
    %43 = vector.shape_cast %42 : vector<1x1x8xf32> to vector<1x8xf32>
    %cst_11 = arith.constant 1.000000e+00 : f32
    %44 = vector.broadcast %cst_11 : f32 to vector<1x8xf32>
    %45 = arith.subf %44, %43 : vector<1x8xf32>
    %cst_12 = arith.constant -1.000000e+04 : f32
    %46 = vector.broadcast %cst_12 : f32 to vector<1x8xf32>
    %47 = arith.mulf %45, %46 : vector<1x8xf32>
    %48 = vector.broadcast %47 : vector<1x8xf32> to vector<8x8xf32>
    %49 = arith.addf %41, %48 : vector<8x8xf32>
    %c0_13 = arith.constant 0 : index
    %c0_14 = arith.constant 0 : index
    %50 = vector.load %arg1[%c0_13, %c0_14] : memref<8x128xf32, #tpu.memory_space<vmem>>, vector<8x128xf32>
    %c0_15 = arith.constant 0 : index
    %c0_16 = arith.constant 0 : index
    %51 = vector.load %arg4[%c0_15, %c0_16] : memref<1x128xf32, #tpu.memory_space<vmem>>, vector<1x128xf32>
    %c0_17 = arith.constant 0 : index
    %c0_18 = arith.constant 0 : index
    %52 = vector.load %arg5[%c0_17, %c0_18] : memref<1x128xf32, #tpu.memory_space<vmem>>, vector<1x128xf32>
    %cst_19 = arith.constant dense<0.000000e+00> : vector<8xf32>
    %53 = vector.multi_reduction <add>, %50, %cst_19 [1] : vector<8x128xf32> to vector<8xf32>
    %54 = vector.shape_cast %53 : vector<8xf32> to vector<8x1xf32>
    %cst_20 = arith.constant 3.125000e-02 : f32
    %55 = vector.broadcast %cst_20 : f32 to vector<8x1xf32>
    %56 = arith.mulf %54, %55 : vector<8x1xf32>
    %57 = vector.broadcast %56 : vector<8x1xf32> to vector<8x128xf32>
    %58 = arith.subf %50, %57 : vector<8x128xf32>
    %59 = vector.broadcast %4 : vector<1x128xf32> to vector<8x128xf32>
    %60 = arith.mulf %58, %59 : vector<8x128xf32>
    %61 = arith.mulf %60, %60 : vector<8x128xf32>
    %cst_21 = arith.constant dense<0.000000e+00> : vector<8xf32>
    %62 = vector.multi_reduction <add>, %61, %cst_21 [1] : vector<8x128xf32> to vector<8xf32>
    %63 = vector.shape_cast %62 : vector<8xf32> to vector<8x1xf32>
    %cst_22 = arith.constant 3.125000e-02 : f32
    %64 = vector.broadcast %cst_22 : f32 to vector<8x1xf32>
    %65 = arith.mulf %63, %64 : vector<8x1xf32>
    %cst_23 = arith.constant 9.99999996E-13 : f32
    %66 = vector.broadcast %cst_23 : f32 to vector<8x1xf32>
    %67 = arith.addf %65, %66 : vector<8x1xf32>
    %68 = math.rsqrt %67 : vector<8x1xf32>
    %69 = vector.broadcast %68 : vector<8x1xf32> to vector<8x128xf32>
    %70 = arith.mulf %60, %69 : vector<8x128xf32>
    %71 = vector.broadcast %51 : vector<1x128xf32> to vector<8x128xf32>
    %72 = arith.mulf %70, %71 : vector<8x128xf32>
    %73 = vector.broadcast %52 : vector<1x128xf32> to vector<8x128xf32>
    %74 = arith.addf %72, %73 : vector<8x128xf32>
    %75 = arith.truncf %74 : vector<8x128xf32> to vector<8x128xbf16>
    %c0_24 = arith.constant 0 : index
    %c0_25 = arith.constant 0 : index
    %c0_26 = arith.constant 0 : index
    %76 = vector.load %arg6[%c0_24, %c0_25, %c0_26] : memref<2x128x384xbf16, #tpu.memory_space<vmem>>, vector<1x128x384xbf16>
    %77 = vector.shape_cast %76 : vector<1x128x384xbf16> to vector<128x384xbf16>
    %cst_27 = arith.constant dense<0.000000e+00> : vector<8x384xf32>
    %78 = tpu.matmul %75, %77, %cst_27 {dimension_numbers = #tpu.dot_dimension_numbers<[1], [0], [0], [1], [0, 0, 1, 1], [], []>} : vector<8x128xbf16>, vector<128x384xbf16>, vector<8x384xf32> -> vector<8x384xf32>
    %c0_28 = arith.constant 0 : index
    %c0_29 = arith.constant 0 : index
    %c0_30 = arith.constant 0 : index
    %79 = vector.load %arg7[%c0_28, %c0_29, %c0_30] : memref<2x1x384xf32, #tpu.memory_space<vmem>>, vector<1x1x384xf32>
    %80 = vector.shape_cast %79 : vector<1x1x384xf32> to vector<1x384xf32>
    %81 = vector.broadcast %80 : vector<1x384xf32> to vector<8x384xf32>
    %82 = arith.addf %78, %81 : vector<8x384xf32>
    %83 = vector.extract_strided_slice %82 {offsets = [0, 0], sizes = [8, 128], strides = [1, 1]} : vector<8x384xf32> to vector<8x128xf32>
    %84 = vector.extract_strided_slice %82 {offsets = [0, 128], sizes = [8, 128], strides = [1, 1]} : vector<8x384xf32> to vector<8x128xf32>
    %85 = arith.truncf %84 : vector<8x128xf32> to vector<8x128xbf16>
    %86 = vector.extract_strided_slice %82 {offsets = [0, 256], sizes = [8, 128], strides = [1, 1]} : vector<8x384xf32> to vector<8x128xf32>
    %87 = arith.truncf %86 : vector<8x128xf32> to vector<8x128xbf16>
    %cst_31 = arith.constant 0.000000e+00 : f32
    %88 = vector.broadcast %cst_31 : f32 to vector<8x128xf32>
    %89 = vector.broadcast %34 : vector<1x128xf32> to vector<8x128xf32>
    %90 = arith.mulf %83, %89 : vector<8x128xf32>
    %91 = arith.truncf %90 : vector<8x128xf32> to vector<8x128xbf16>
    %cst_32 = arith.constant dense<0.000000e+00> : vector<8x8xf32>
    %92 = tpu.matmul %91, %85, %cst_32 {dimension_numbers = #tpu.dot_dimension_numbers<[1], [1], [0], [0], [0, 0, 1, 0], [], []>} : vector<8x128xbf16>, vector<8x128xbf16>, vector<8x8xf32> -> vector<8x8xf32>
    %93 = arith.addf %92, %49 : vector<8x8xf32>
    %cst_33 = arith.constant dense<0xFF800000> : vector<8xf32>
    %94 = vector.multi_reduction <maximumf>, %93, %cst_33 [1] : vector<8x8xf32> to vector<8xf32>
    %95 = vector.shape_cast %94 : vector<8xf32> to vector<8x1xf32>
    %96 = vector.broadcast %95 : vector<8x1xf32> to vector<8x8xf32>
    %97 = arith.subf %93, %96 : vector<8x8xf32>
    %98 = math.exp %97 : vector<8x8xf32>
    %cst_34 = arith.constant dense<0.000000e+00> : vector<8xf32>
    %99 = vector.multi_reduction <add>, %98, %cst_34 [1] : vector<8x8xf32> to vector<8xf32>
    %100 = vector.shape_cast %99 : vector<8xf32> to vector<8x1xf32>
    %101 = tpu.reciprocal %100 {approx = true} : vector<8x1xf32> -> vector<8x1xf32>
    %102 = vector.broadcast %101 : vector<8x1xf32> to vector<8x8xf32>
    %103 = arith.mulf %98, %102 : vector<8x8xf32>
    %104 = arith.truncf %103 : vector<8x8xf32> to vector<8x8xbf16>
    %cst_35 = arith.constant dense<0.000000e+00> : vector<8x128xf32>
    %105 = tpu.matmul %104, %87, %cst_35 {dimension_numbers = #tpu.dot_dimension_numbers<[1], [0], [0], [1], [0, 0, 1, 1], [], []>} : vector<8x8xbf16>, vector<8x128xbf16>, vector<8x128xf32> -> vector<8x128xf32>
    %106 = vector.broadcast %11 : vector<1x128xf32> to vector<8x128xf32>
    %107 = arith.mulf %105, %106 : vector<8x128xf32>
    %108 = arith.addf %88, %107 : vector<8x128xf32>
    %109 = vector.broadcast %36 : vector<1x128xf32> to vector<8x128xf32>
    %110 = arith.mulf %83, %109 : vector<8x128xf32>
    %111 = arith.truncf %110 : vector<8x128xf32> to vector<8x128xbf16>
    %cst_36 = arith.constant dense<0.000000e+00> : vector<8x8xf32>
    %112 = tpu.matmul %111, %85, %cst_36 {dimension_numbers = #tpu.dot_dimension_numbers<[1], [1], [0], [0], [0, 0, 1, 0], [], []>} : vector<8x128xbf16>, vector<8x128xbf16>, vector<8x8xf32> -> vector<8x8xf32>
    %113 = arith.addf %112, %49 : vector<8x8xf32>
    %cst_37 = arith.constant dense<0xFF800000> : vector<8xf32>
    %114 = vector.multi_reduction <maximumf>, %113, %cst_37 [1] : vector<8x8xf32> to vector<8xf32>
    %115 = vector.shape_cast %114 : vector<8xf32> to vector<8x1xf32>
    %116 = vector.broadcast %115 : vector<8x1xf32> to vector<8x8xf32>
    %117 = arith.subf %113, %116 : vector<8x8xf32>
    %118 = math.exp %117 : vector<8x8xf32>
    %cst_38 = arith.constant dense<0.000000e+00> : vector<8xf32>
    %119 = vector.multi_reduction <add>, %118, %cst_38 [1] : vector<8x8xf32> to vector<8xf32>
    %120 = vector.shape_cast %119 : vector<8xf32> to vector<8x1xf32>
    %121 = tpu.reciprocal %120 {approx = true} : vector<8x1xf32> -> vector<8x1xf32>
    %122 = vector.broadcast %121 : vector<8x1xf32> to vector<8x8xf32>
    %123 = arith.mulf %118, %122 : vector<8x8xf32>
    %124 = arith.truncf %123 : vector<8x8xf32> to vector<8x8xbf16>
    %cst_39 = arith.constant dense<0.000000e+00> : vector<8x128xf32>
    %125 = tpu.matmul %124, %87, %cst_39 {dimension_numbers = #tpu.dot_dimension_numbers<[1], [0], [0], [1], [0, 0, 1, 1], [], []>} : vector<8x8xbf16>, vector<8x128xbf16>, vector<8x128xf32> -> vector<8x128xf32>
    %126 = vector.broadcast %18 : vector<1x128xf32> to vector<8x128xf32>
    %127 = arith.mulf %125, %126 : vector<8x128xf32>
    %128 = arith.addf %108, %127 : vector<8x128xf32>
    %129 = vector.broadcast %38 : vector<1x128xf32> to vector<8x128xf32>
    %130 = arith.mulf %83, %129 : vector<8x128xf32>
    %131 = arith.truncf %130 : vector<8x128xf32> to vector<8x128xbf16>
    %cst_40 = arith.constant dense<0.000000e+00> : vector<8x8xf32>
    %132 = tpu.matmul %131, %85, %cst_40 {dimension_numbers = #tpu.dot_dimension_numbers<[1], [1], [0], [0], [0, 0, 1, 0], [], []>} : vector<8x128xbf16>, vector<8x128xbf16>, vector<8x8xf32> -> vector<8x8xf32>
    %133 = arith.addf %132, %49 : vector<8x8xf32>
    %cst_41 = arith.constant dense<0xFF800000> : vector<8xf32>
    %134 = vector.multi_reduction <maximumf>, %133, %cst_41 [1] : vector<8x8xf32> to vector<8xf32>
    %135 = vector.shape_cast %134 : vector<8xf32> to vector<8x1xf32>
    %136 = vector.broadcast %135 : vector<8x1xf32> to vector<8x8xf32>
    %137 = arith.subf %133, %136 : vector<8x8xf32>
    %138 = math.exp %137 : vector<8x8xf32>
    %cst_42 = arith.constant dense<0.000000e+00> : vector<8xf32>
    %139 = vector.multi_reduction <add>, %138, %cst_42 [1] : vector<8x8xf32> to vector<8xf32>
    %140 = vector.shape_cast %139 : vector<8xf32> to vector<8x1xf32>
    %141 = tpu.reciprocal %140 {approx = true} : vector<8x1xf32> -> vector<8x1xf32>
    %142 = vector.broadcast %141 : vector<8x1xf32> to vector<8x8xf32>
    %143 = arith.mulf %138, %142 : vector<8x8xf32>
    %144 = arith.truncf %143 : vector<8x8xf32> to vector<8x8xbf16>
    %cst_43 = arith.constant dense<0.000000e+00> : vector<8x128xf32>
    %145 = tpu.matmul %144, %87, %cst_43 {dimension_numbers = #tpu.dot_dimension_numbers<[1], [0], [0], [1], [0, 0, 1, 1], [], []>} : vector<8x8xbf16>, vector<8x128xbf16>, vector<8x128xf32> -> vector<8x128xf32>
    %146 = vector.broadcast %25 : vector<1x128xf32> to vector<8x128xf32>
    %147 = arith.mulf %145, %146 : vector<8x128xf32>
    %148 = arith.addf %128, %147 : vector<8x128xf32>
    %149 = vector.broadcast %40 : vector<1x128xf32> to vector<8x128xf32>
    %150 = arith.mulf %83, %149 : vector<8x128xf32>
    %151 = arith.truncf %150 : vector<8x128xf32> to vector<8x128xbf16>
    %cst_44 = arith.constant dense<0.000000e+00> : vector<8x8xf32>
    %152 = tpu.matmul %151, %85, %cst_44 {dimension_numbers = #tpu.dot_dimension_numbers<[1], [1], [0], [0], [0, 0, 1, 0], [], []>} : vector<8x128xbf16>, vector<8x128xbf16>, vector<8x8xf32> -> vector<8x8xf32>
    %153 = arith.addf %152, %49 : vector<8x8xf32>
    %cst_45 = arith.constant dense<0xFF800000> : vector<8xf32>
    %154 = vector.multi_reduction <maximumf>, %153, %cst_45 [1] : vector<8x8xf32> to vector<8xf32>
    %155 = vector.shape_cast %154 : vector<8xf32> to vector<8x1xf32>
    %156 = vector.broadcast %155 : vector<8x1xf32> to vector<8x8xf32>
    %157 = arith.subf %153, %156 : vector<8x8xf32>
    %158 = math.exp %157 : vector<8x8xf32>
    %cst_46 = arith.constant dense<0.000000e+00> : vector<8xf32>
    %159 = vector.multi_reduction <add>, %158, %cst_46 [1] : vector<8x8xf32> to vector<8xf32>
    %160 = vector.shape_cast %159 : vector<8xf32> to vector<8x1xf32>
    %161 = tpu.reciprocal %160 {approx = true} : vector<8x1xf32> -> vector<8x1xf32>
    %162 = vector.broadcast %161 : vector<8x1xf32> to vector<8x8xf32>
    %163 = arith.mulf %158, %162 : vector<8x8xf32>
    %164 = arith.truncf %163 : vector<8x8xf32> to vector<8x8xbf16>
    %cst_47 = arith.constant dense<0.000000e+00> : vector<8x128xf32>
    %165 = tpu.matmul %164, %87, %cst_47 {dimension_numbers = #tpu.dot_dimension_numbers<[1], [0], [0], [1], [0, 0, 1, 1], [], []>} : vector<8x8xbf16>, vector<8x128xbf16>, vector<8x128xf32> -> vector<8x128xf32>
    %166 = vector.broadcast %32 : vector<1x128xf32> to vector<8x128xf32>
    %167 = arith.mulf %165, %166 : vector<8x128xf32>
    %168 = arith.addf %148, %167 : vector<8x128xf32>
    %169 = arith.truncf %168 : vector<8x128xf32> to vector<8x128xbf16>
    %c0_48 = arith.constant 0 : index
    %c0_49 = arith.constant 0 : index
    %c0_50 = arith.constant 0 : index
    %170 = vector.load %arg8[%c0_48, %c0_49, %c0_50] : memref<2x128x128xbf16, #tpu.memory_space<vmem>>, vector<1x128x128xbf16>
    %171 = vector.shape_cast %170 : vector<1x128x128xbf16> to vector<128x128xbf16>
    %cst_51 = arith.constant dense<0.000000e+00> : vector<8x128xf32>
    %172 = tpu.matmul %169, %171, %cst_51 {dimension_numbers = #tpu.dot_dimension_numbers<[1], [0], [0], [1], [0, 0, 1, 1], [], []>} : vector<8x128xbf16>, vector<128x128xbf16>, vector<8x128xf32> -> vector<8x128xf32>
    %c0_52 = arith.constant 0 : index
    %c0_53 = arith.constant 0 : index
    %c0_54 = arith.constant 0 : index
    %173 = vector.load %arg9[%c0_52, %c0_53, %c0_54] : memref<2x1x128xf32, #tpu.memory_space<vmem>>, vector<1x1x128xf32>
    %174 = vector.shape_cast %173 : vector<1x1x128xf32> to vector<1x128xf32>
    %175 = vector.broadcast %174 : vector<1x128xf32> to vector<8x128xf32>
    %176 = arith.addf %172, %175 : vector<8x128xf32>
    %177 = arith.addf %176, %74 : vector<8x128xf32>
    %c0_55 = arith.constant 0 : index
    %c0_56 = arith.constant 0 : index
    %c0_57 = arith.constant 0 : index
    %178 = vector.load %arg10[%c0_55, %c0_56, %c0_57] : memref<2x1x128xf32, #tpu.memory_space<vmem>>, vector<1x1x128xf32>
    %179 = vector.shape_cast %178 : vector<1x1x128xf32> to vector<1x128xf32>
    %c0_58 = arith.constant 0 : index
    %c0_59 = arith.constant 0 : index
    %c0_60 = arith.constant 0 : index
    %180 = vector.load %arg11[%c0_58, %c0_59, %c0_60] : memref<2x1x128xf32, #tpu.memory_space<vmem>>, vector<1x1x128xf32>
    %181 = vector.shape_cast %180 : vector<1x1x128xf32> to vector<1x128xf32>
    %cst_61 = arith.constant dense<0.000000e+00> : vector<8xf32>
    %182 = vector.multi_reduction <add>, %177, %cst_61 [1] : vector<8x128xf32> to vector<8xf32>
    %183 = vector.shape_cast %182 : vector<8xf32> to vector<8x1xf32>
    %cst_62 = arith.constant 3.125000e-02 : f32
    %184 = vector.broadcast %cst_62 : f32 to vector<8x1xf32>
    %185 = arith.mulf %183, %184 : vector<8x1xf32>
    %186 = vector.broadcast %185 : vector<8x1xf32> to vector<8x128xf32>
    %187 = arith.subf %177, %186 : vector<8x128xf32>
    %188 = vector.broadcast %4 : vector<1x128xf32> to vector<8x128xf32>
    %189 = arith.mulf %187, %188 : vector<8x128xf32>
    %190 = arith.mulf %189, %189 : vector<8x128xf32>
    %cst_63 = arith.constant dense<0.000000e+00> : vector<8xf32>
    %191 = vector.multi_reduction <add>, %190, %cst_63 [1] : vector<8x128xf32> to vector<8xf32>
    %192 = vector.shape_cast %191 : vector<8xf32> to vector<8x1xf32>
    %cst_64 = arith.constant 3.125000e-02 : f32
    %193 = vector.broadcast %cst_64 : f32 to vector<8x1xf32>
    %194 = arith.mulf %192, %193 : vector<8x1xf32>
    %cst_65 = arith.constant 9.99999996E-13 : f32
    %195 = vector.broadcast %cst_65 : f32 to vector<8x1xf32>
    %196 = arith.addf %194, %195 : vector<8x1xf32>
    %197 = math.rsqrt %196 : vector<8x1xf32>
    %198 = vector.broadcast %197 : vector<8x1xf32> to vector<8x128xf32>
    %199 = arith.mulf %189, %198 : vector<8x128xf32>
    %200 = vector.broadcast %179 : vector<1x128xf32> to vector<8x128xf32>
    %201 = arith.mulf %199, %200 : vector<8x128xf32>
    %202 = vector.broadcast %181 : vector<1x128xf32> to vector<8x128xf32>
    %203 = arith.addf %201, %202 : vector<8x128xf32>
    %204 = arith.truncf %203 : vector<8x128xf32> to vector<8x128xbf16>
    %c0_66 = arith.constant 0 : index
    %c0_67 = arith.constant 0 : index
    %c0_68 = arith.constant 0 : index
    %205 = vector.load %arg12[%c0_66, %c0_67, %c0_68] : memref<2x128x128xbf16, #tpu.memory_space<vmem>>, vector<1x128x128xbf16>
    %206 = vector.shape_cast %205 : vector<1x128x128xbf16> to vector<128x128xbf16>
    %cst_69 = arith.constant dense<0.000000e+00> : vector<8x128xf32>
    %207 = tpu.matmul %204, %206, %cst_69 {dimension_numbers = #tpu.dot_dimension_numbers<[1], [0], [0], [1], [0, 0, 1, 1], [], []>} : vector<8x128xbf16>, vector<128x128xbf16>, vector<8x128xf32> -> vector<8x128xf32>
    %c0_70 = arith.constant 0 : index
    %c0_71 = arith.constant 0 : index
    %c0_72 = arith.constant 0 : index
    %208 = vector.load %arg13[%c0_70, %c0_71, %c0_72] : memref<2x1x128xf32, #tpu.memory_space<vmem>>, vector<1x1x128xf32>
    %209 = vector.shape_cast %208 : vector<1x1x128xf32> to vector<1x128xf32>
    %210 = vector.broadcast %209 : vector<1x128xf32> to vector<8x128xf32>
    %211 = arith.addf %207, %210 : vector<8x128xf32>
    %212 = arith.mulf %211, %211 : vector<8x128xf32>
    %213 = arith.mulf %211, %212 : vector<8x128xf32>
    %cst_73 = arith.constant 4.471500e-02 : f32
    %214 = vector.broadcast %cst_73 : f32 to vector<8x128xf32>
    %215 = arith.mulf %214, %213 : vector<8x128xf32>
    %216 = arith.addf %211, %215 : vector<8x128xf32>
    %cst_74 = arith.constant 0.797884583 : f32
    %217 = vector.broadcast %cst_74 : f32 to vector<8x128xf32>
    %218 = arith.mulf %217, %216 : vector<8x128xf32>
    %219 = math.tanh %218 : vector<8x128xf32>
    %cst_75 = arith.constant 1.000000e+00 : f32
    %220 = vector.broadcast %cst_75 : f32 to vector<8x128xf32>
    %221 = arith.addf %220, %219 : vector<8x128xf32>
    %cst_76 = arith.constant 5.000000e-01 : f32
    %222 = vector.broadcast %cst_76 : f32 to vector<8x128xf32>
    %223 = arith.mulf %222, %221 : vector<8x128xf32>
    %224 = arith.mulf %211, %223 : vector<8x128xf32>
    %225 = arith.truncf %224 : vector<8x128xf32> to vector<8x128xbf16>
    %c0_77 = arith.constant 0 : index
    %c0_78 = arith.constant 0 : index
    %c0_79 = arith.constant 0 : index
    %226 = vector.load %arg14[%c0_77, %c0_78, %c0_79] : memref<2x128x128xbf16, #tpu.memory_space<vmem>>, vector<1x128x128xbf16>
    %227 = vector.shape_cast %226 : vector<1x128x128xbf16> to vector<128x128xbf16>
    %cst_80 = arith.constant dense<0.000000e+00> : vector<8x128xf32>
    %228 = tpu.matmul %225, %227, %cst_80 {dimension_numbers = #tpu.dot_dimension_numbers<[1], [0], [0], [1], [0, 0, 1, 1], [], []>} : vector<8x128xbf16>, vector<128x128xbf16>, vector<8x128xf32> -> vector<8x128xf32>
    %c0_81 = arith.constant 0 : index
    %c0_82 = arith.constant 0 : index
    %c0_83 = arith.constant 0 : index
    %229 = vector.load %arg15[%c0_81, %c0_82, %c0_83] : memref<2x1x128xf32, #tpu.memory_space<vmem>>, vector<1x1x128xf32>
    %230 = vector.shape_cast %229 : vector<1x1x128xf32> to vector<1x128xf32>
    %231 = vector.broadcast %230 : vector<1x128xf32> to vector<8x128xf32>
    %232 = arith.addf %228, %231 : vector<8x128xf32>
    %233 = arith.addf %232, %203 : vector<8x128xf32>
    %c0_84 = arith.constant 0 : index
    %c0_85 = arith.constant 0 : index
    %c0_86 = arith.constant 0 : index
    %234 = vector.load %arg16[%c0_84, %c0_85, %c0_86] : memref<2x1x128xf32, #tpu.memory_space<vmem>>, vector<1x1x128xf32>
    %235 = vector.shape_cast %234 : vector<1x1x128xf32> to vector<1x128xf32>
    %c0_87 = arith.constant 0 : index
    %c0_88 = arith.constant 0 : index
    %c0_89 = arith.constant 0 : index
    %236 = vector.load %arg17[%c0_87, %c0_88, %c0_89] : memref<2x1x128xf32, #tpu.memory_space<vmem>>, vector<1x1x128xf32>
    %237 = vector.shape_cast %236 : vector<1x1x128xf32> to vector<1x128xf32>
    %cst_90 = arith.constant dense<0.000000e+00> : vector<8xf32>
    %238 = vector.multi_reduction <add>, %233, %cst_90 [1] : vector<8x128xf32> to vector<8xf32>
    %239 = vector.shape_cast %238 : vector<8xf32> to vector<8x1xf32>
    %cst_91 = arith.constant 3.125000e-02 : f32
    %240 = vector.broadcast %cst_91 : f32 to vector<8x1xf32>
    %241 = arith.mulf %239, %240 : vector<8x1xf32>
    %242 = vector.broadcast %241 : vector<8x1xf32> to vector<8x128xf32>
    %243 = arith.subf %233, %242 : vector<8x128xf32>
    %244 = vector.broadcast %4 : vector<1x128xf32> to vector<8x128xf32>
    %245 = arith.mulf %243, %244 : vector<8x128xf32>
    %246 = arith.mulf %245, %245 : vector<8x128xf32>
    %cst_92 = arith.constant dense<0.000000e+00> : vector<8xf32>
    %247 = vector.multi_reduction <add>, %246, %cst_92 [1] : vector<8x128xf32> to vector<8xf32>
    %248 = vector.shape_cast %247 : vector<8xf32> to vector<8x1xf32>
    %cst_93 = arith.constant 3.125000e-02 : f32
    %249 = vector.broadcast %cst_93 : f32 to vector<8x1xf32>
    %250 = arith.mulf %248, %249 : vector<8x1xf32>
    %cst_94 = arith.constant 9.99999996E-13 : f32
    %251 = vector.broadcast %cst_94 : f32 to vector<8x1xf32>
    %252 = arith.addf %250, %251 : vector<8x1xf32>
    %253 = math.rsqrt %252 : vector<8x1xf32>
    %254 = vector.broadcast %253 : vector<8x1xf32> to vector<8x128xf32>
    %255 = arith.mulf %245, %254 : vector<8x128xf32>
    %256 = vector.broadcast %235 : vector<1x128xf32> to vector<8x128xf32>
    %257 = arith.mulf %255, %256 : vector<8x128xf32>
    %258 = vector.broadcast %237 : vector<1x128xf32> to vector<8x128xf32>
    %259 = arith.addf %257, %258 : vector<8x128xf32>
    %260 = arith.truncf %259 : vector<8x128xf32> to vector<8x128xbf16>
    %c1 = arith.constant 1 : index
    %c0_95 = arith.constant 0 : index
    %c0_96 = arith.constant 0 : index
    %261 = vector.load %arg6[%c1, %c0_95, %c0_96] : memref<2x128x384xbf16, #tpu.memory_space<vmem>>, vector<1x128x384xbf16>
    %262 = vector.shape_cast %261 : vector<1x128x384xbf16> to vector<128x384xbf16>
    %cst_97 = arith.constant dense<0.000000e+00> : vector<8x384xf32>
    %263 = tpu.matmul %260, %262, %cst_97 {dimension_numbers = #tpu.dot_dimension_numbers<[1], [0], [0], [1], [0, 0, 1, 1], [], []>} : vector<8x128xbf16>, vector<128x384xbf16>, vector<8x384xf32> -> vector<8x384xf32>
    %c1_98 = arith.constant 1 : index
    %c0_99 = arith.constant 0 : index
    %c0_100 = arith.constant 0 : index
    %264 = vector.load %arg7[%c1_98, %c0_99, %c0_100] : memref<2x1x384xf32, #tpu.memory_space<vmem>>, vector<1x1x384xf32>
    %265 = vector.shape_cast %264 : vector<1x1x384xf32> to vector<1x384xf32>
    %266 = vector.broadcast %265 : vector<1x384xf32> to vector<8x384xf32>
    %267 = arith.addf %263, %266 : vector<8x384xf32>
    %268 = vector.extract_strided_slice %267 {offsets = [0, 0], sizes = [8, 128], strides = [1, 1]} : vector<8x384xf32> to vector<8x128xf32>
    %269 = vector.extract_strided_slice %267 {offsets = [0, 128], sizes = [8, 128], strides = [1, 1]} : vector<8x384xf32> to vector<8x128xf32>
    %270 = arith.truncf %269 : vector<8x128xf32> to vector<8x128xbf16>
    %271 = vector.extract_strided_slice %267 {offsets = [0, 256], sizes = [8, 128], strides = [1, 1]} : vector<8x384xf32> to vector<8x128xf32>
    %272 = arith.truncf %271 : vector<8x128xf32> to vector<8x128xbf16>
    %cst_101 = arith.constant 0.000000e+00 : f32
    %273 = vector.broadcast %cst_101 : f32 to vector<8x128xf32>
    %274 = vector.broadcast %34 : vector<1x128xf32> to vector<8x128xf32>
    %275 = arith.mulf %268, %274 : vector<8x128xf32>
    %276 = arith.truncf %275 : vector<8x128xf32> to vector<8x128xbf16>
    %cst_102 = arith.constant dense<0.000000e+00> : vector<8x8xf32>
    %277 = tpu.matmul %276, %270, %cst_102 {dimension_numbers = #tpu.dot_dimension_numbers<[1], [1], [0], [0], [0, 0, 1, 0], [], []>} : vector<8x128xbf16>, vector<8x128xbf16>, vector<8x8xf32> -> vector<8x8xf32>
    %278 = arith.addf %277, %49 : vector<8x8xf32>
    %cst_103 = arith.constant dense<0xFF800000> : vector<8xf32>
    %279 = vector.multi_reduction <maximumf>, %278, %cst_103 [1] : vector<8x8xf32> to vector<8xf32>
    %280 = vector.shape_cast %279 : vector<8xf32> to vector<8x1xf32>
    %281 = vector.broadcast %280 : vector<8x1xf32> to vector<8x8xf32>
    %282 = arith.subf %278, %281 : vector<8x8xf32>
    %283 = math.exp %282 : vector<8x8xf32>
    %cst_104 = arith.constant dense<0.000000e+00> : vector<8xf32>
    %284 = vector.multi_reduction <add>, %283, %cst_104 [1] : vector<8x8xf32> to vector<8xf32>
    %285 = vector.shape_cast %284 : vector<8xf32> to vector<8x1xf32>
    %286 = tpu.reciprocal %285 {approx = true} : vector<8x1xf32> -> vector<8x1xf32>
    %287 = vector.broadcast %286 : vector<8x1xf32> to vector<8x8xf32>
    %288 = arith.mulf %283, %287 : vector<8x8xf32>
    %289 = arith.truncf %288 : vector<8x8xf32> to vector<8x8xbf16>
    %cst_105 = arith.constant dense<0.000000e+00> : vector<8x128xf32>
    %290 = tpu.matmul %289, %272, %cst_105 {dimension_numbers = #tpu.dot_dimension_numbers<[1], [0], [0], [1], [0, 0, 1, 1], [], []>} : vector<8x8xbf16>, vector<8x128xbf16>, vector<8x128xf32> -> vector<8x128xf32>
    %291 = vector.broadcast %11 : vector<1x128xf32> to vector<8x128xf32>
    %292 = arith.mulf %290, %291 : vector<8x128xf32>
    %293 = arith.addf %273, %292 : vector<8x128xf32>
    %294 = vector.broadcast %36 : vector<1x128xf32> to vector<8x128xf32>
    %295 = arith.mulf %268, %294 : vector<8x128xf32>
    %296 = arith.truncf %295 : vector<8x128xf32> to vector<8x128xbf16>
    %cst_106 = arith.constant dense<0.000000e+00> : vector<8x8xf32>
    %297 = tpu.matmul %296, %270, %cst_106 {dimension_numbers = #tpu.dot_dimension_numbers<[1], [1], [0], [0], [0, 0, 1, 0], [], []>} : vector<8x128xbf16>, vector<8x128xbf16>, vector<8x8xf32> -> vector<8x8xf32>
    %298 = arith.addf %297, %49 : vector<8x8xf32>
    %cst_107 = arith.constant dense<0xFF800000> : vector<8xf32>
    %299 = vector.multi_reduction <maximumf>, %298, %cst_107 [1] : vector<8x8xf32> to vector<8xf32>
    %300 = vector.shape_cast %299 : vector<8xf32> to vector<8x1xf32>
    %301 = vector.broadcast %300 : vector<8x1xf32> to vector<8x8xf32>
    %302 = arith.subf %298, %301 : vector<8x8xf32>
    %303 = math.exp %302 : vector<8x8xf32>
    %cst_108 = arith.constant dense<0.000000e+00> : vector<8xf32>
    %304 = vector.multi_reduction <add>, %303, %cst_108 [1] : vector<8x8xf32> to vector<8xf32>
    %305 = vector.shape_cast %304 : vector<8xf32> to vector<8x1xf32>
    %306 = tpu.reciprocal %305 {approx = true} : vector<8x1xf32> -> vector<8x1xf32>
    %307 = vector.broadcast %306 : vector<8x1xf32> to vector<8x8xf32>
    %308 = arith.mulf %303, %307 : vector<8x8xf32>
    %309 = arith.truncf %308 : vector<8x8xf32> to vector<8x8xbf16>
    %cst_109 = arith.constant dense<0.000000e+00> : vector<8x128xf32>
    %310 = tpu.matmul %309, %272, %cst_109 {dimension_numbers = #tpu.dot_dimension_numbers<[1], [0], [0], [1], [0, 0, 1, 1], [], []>} : vector<8x8xbf16>, vector<8x128xbf16>, vector<8x128xf32> -> vector<8x128xf32>
    %311 = vector.broadcast %18 : vector<1x128xf32> to vector<8x128xf32>
    %312 = arith.mulf %310, %311 : vector<8x128xf32>
    %313 = arith.addf %293, %312 : vector<8x128xf32>
    %314 = vector.broadcast %38 : vector<1x128xf32> to vector<8x128xf32>
    %315 = arith.mulf %268, %314 : vector<8x128xf32>
    %316 = arith.truncf %315 : vector<8x128xf32> to vector<8x128xbf16>
    %cst_110 = arith.constant dense<0.000000e+00> : vector<8x8xf32>
    %317 = tpu.matmul %316, %270, %cst_110 {dimension_numbers = #tpu.dot_dimension_numbers<[1], [1], [0], [0], [0, 0, 1, 0], [], []>} : vector<8x128xbf16>, vector<8x128xbf16>, vector<8x8xf32> -> vector<8x8xf32>
    %318 = arith.addf %317, %49 : vector<8x8xf32>
    %cst_111 = arith.constant dense<0xFF800000> : vector<8xf32>
    %319 = vector.multi_reduction <maximumf>, %318, %cst_111 [1] : vector<8x8xf32> to vector<8xf32>
    %320 = vector.shape_cast %319 : vector<8xf32> to vector<8x1xf32>
    %321 = vector.broadcast %320 : vector<8x1xf32> to vector<8x8xf32>
    %322 = arith.subf %318, %321 : vector<8x8xf32>
    %323 = math.exp %322 : vector<8x8xf32>
    %cst_112 = arith.constant dense<0.000000e+00> : vector<8xf32>
    %324 = vector.multi_reduction <add>, %323, %cst_112 [1] : vector<8x8xf32> to vector<8xf32>
    %325 = vector.shape_cast %324 : vector<8xf32> to vector<8x1xf32>
    %326 = tpu.reciprocal %325 {approx = true} : vector<8x1xf32> -> vector<8x1xf32>
    %327 = vector.broadcast %326 : vector<8x1xf32> to vector<8x8xf32>
    %328 = arith.mulf %323, %327 : vector<8x8xf32>
    %329 = arith.truncf %328 : vector<8x8xf32> to vector<8x8xbf16>
    %cst_113 = arith.constant dense<0.000000e+00> : vector<8x128xf32>
    %330 = tpu.matmul %329, %272, %cst_113 {dimension_numbers = #tpu.dot_dimension_numbers<[1], [0], [0], [1], [0, 0, 1, 1], [], []>} : vector<8x8xbf16>, vector<8x128xbf16>, vector<8x128xf32> -> vector<8x128xf32>
    %331 = vector.broadcast %25 : vector<1x128xf32> to vector<8x128xf32>
    %332 = arith.mulf %330, %331 : vector<8x128xf32>
    %333 = arith.addf %313, %332 : vector<8x128xf32>
    %334 = vector.broadcast %40 : vector<1x128xf32> to vector<8x128xf32>
    %335 = arith.mulf %268, %334 : vector<8x128xf32>
    %336 = arith.truncf %335 : vector<8x128xf32> to vector<8x128xbf16>
    %cst_114 = arith.constant dense<0.000000e+00> : vector<8x8xf32>
    %337 = tpu.matmul %336, %270, %cst_114 {dimension_numbers = #tpu.dot_dimension_numbers<[1], [1], [0], [0], [0, 0, 1, 0], [], []>} : vector<8x128xbf16>, vector<8x128xbf16>, vector<8x8xf32> -> vector<8x8xf32>
    %338 = arith.addf %337, %49 : vector<8x8xf32>
    %cst_115 = arith.constant dense<0xFF800000> : vector<8xf32>
    %339 = vector.multi_reduction <maximumf>, %338, %cst_115 [1] : vector<8x8xf32> to vector<8xf32>
    %340 = vector.shape_cast %339 : vector<8xf32> to vector<8x1xf32>
    %341 = vector.broadcast %340 : vector<8x1xf32> to vector<8x8xf32>
    %342 = arith.subf %338, %341 : vector<8x8xf32>
    %343 = math.exp %342 : vector<8x8xf32>
    %cst_116 = arith.constant dense<0.000000e+00> : vector<8xf32>
    %344 = vector.multi_reduction <add>, %343, %cst_116 [1] : vector<8x8xf32> to vector<8xf32>
    %345 = vector.shape_cast %344 : vector<8xf32> to vector<8x1xf32>
    %346 = tpu.reciprocal %345 {approx = true} : vector<8x1xf32> -> vector<8x1xf32>
    %347 = vector.broadcast %346 : vector<8x1xf32> to vector<8x8xf32>
    %348 = arith.mulf %343, %347 : vector<8x8xf32>
    %349 = arith.truncf %348 : vector<8x8xf32> to vector<8x8xbf16>
    %cst_117 = arith.constant dense<0.000000e+00> : vector<8x128xf32>
    %350 = tpu.matmul %349, %272, %cst_117 {dimension_numbers = #tpu.dot_dimension_numbers<[1], [0], [0], [1], [0, 0, 1, 1], [], []>} : vector<8x8xbf16>, vector<8x128xbf16>, vector<8x128xf32> -> vector<8x128xf32>
    %351 = vector.broadcast %32 : vector<1x128xf32> to vector<8x128xf32>
    %352 = arith.mulf %350, %351 : vector<8x128xf32>
    %353 = arith.addf %333, %352 : vector<8x128xf32>
    %354 = arith.truncf %353 : vector<8x128xf32> to vector<8x128xbf16>
    %c1_118 = arith.constant 1 : index
    %c0_119 = arith.constant 0 : index
    %c0_120 = arith.constant 0 : index
    %355 = vector.load %arg8[%c1_118, %c0_119, %c0_120] : memref<2x128x128xbf16, #tpu.memory_space<vmem>>, vector<1x128x128xbf16>
    %356 = vector.shape_cast %355 : vector<1x128x128xbf16> to vector<128x128xbf16>
    %cst_121 = arith.constant dense<0.000000e+00> : vector<8x128xf32>
    %357 = tpu.matmul %354, %356, %cst_121 {dimension_numbers = #tpu.dot_dimension_numbers<[1], [0], [0], [1], [0, 0, 1, 1], [], []>} : vector<8x128xbf16>, vector<128x128xbf16>, vector<8x128xf32> -> vector<8x128xf32>
    %c1_122 = arith.constant 1 : index
    %c0_123 = arith.constant 0 : index
    %c0_124 = arith.constant 0 : index
    %358 = vector.load %arg9[%c1_122, %c0_123, %c0_124] : memref<2x1x128xf32, #tpu.memory_space<vmem>>, vector<1x1x128xf32>
    %359 = vector.shape_cast %358 : vector<1x1x128xf32> to vector<1x128xf32>
    %360 = vector.broadcast %359 : vector<1x128xf32> to vector<8x128xf32>
    %361 = arith.addf %357, %360 : vector<8x128xf32>
    %362 = arith.addf %361, %259 : vector<8x128xf32>
    %c1_125 = arith.constant 1 : index
    %c0_126 = arith.constant 0 : index
    %c0_127 = arith.constant 0 : index
    %363 = vector.load %arg10[%c1_125, %c0_126, %c0_127] : memref<2x1x128xf32, #tpu.memory_space<vmem>>, vector<1x1x128xf32>
    %364 = vector.shape_cast %363 : vector<1x1x128xf32> to vector<1x128xf32>
    %c1_128 = arith.constant 1 : index
    %c0_129 = arith.constant 0 : index
    %c0_130 = arith.constant 0 : index
    %365 = vector.load %arg11[%c1_128, %c0_129, %c0_130] : memref<2x1x128xf32, #tpu.memory_space<vmem>>, vector<1x1x128xf32>
    %366 = vector.shape_cast %365 : vector<1x1x128xf32> to vector<1x128xf32>
    %cst_131 = arith.constant dense<0.000000e+00> : vector<8xf32>
    %367 = vector.multi_reduction <add>, %362, %cst_131 [1] : vector<8x128xf32> to vector<8xf32>
    %368 = vector.shape_cast %367 : vector<8xf32> to vector<8x1xf32>
    %cst_132 = arith.constant 3.125000e-02 : f32
    %369 = vector.broadcast %cst_132 : f32 to vector<8x1xf32>
    %370 = arith.mulf %368, %369 : vector<8x1xf32>
    %371 = vector.broadcast %370 : vector<8x1xf32> to vector<8x128xf32>
    %372 = arith.subf %362, %371 : vector<8x128xf32>
    %373 = vector.broadcast %4 : vector<1x128xf32> to vector<8x128xf32>
    %374 = arith.mulf %372, %373 : vector<8x128xf32>
    %375 = arith.mulf %374, %374 : vector<8x128xf32>
    %cst_133 = arith.constant dense<0.000000e+00> : vector<8xf32>
    %376 = vector.multi_reduction <add>, %375, %cst_133 [1] : vector<8x128xf32> to vector<8xf32>
    %377 = vector.shape_cast %376 : vector<8xf32> to vector<8x1xf32>
    %cst_134 = arith.constant 3.125000e-02 : f32
    %378 = vector.broadcast %cst_134 : f32 to vector<8x1xf32>
    %379 = arith.mulf %377, %378 : vector<8x1xf32>
    %cst_135 = arith.constant 9.99999996E-13 : f32
    %380 = vector.broadcast %cst_135 : f32 to vector<8x1xf32>
    %381 = arith.addf %379, %380 : vector<8x1xf32>
    %382 = math.rsqrt %381 : vector<8x1xf32>
    %383 = vector.broadcast %382 : vector<8x1xf32> to vector<8x128xf32>
    %384 = arith.mulf %374, %383 : vector<8x128xf32>
    %385 = vector.broadcast %364 : vector<1x128xf32> to vector<8x128xf32>
    %386 = arith.mulf %384, %385 : vector<8x128xf32>
    %387 = vector.broadcast %366 : vector<1x128xf32> to vector<8x128xf32>
    %388 = arith.addf %386, %387 : vector<8x128xf32>
    %389 = arith.truncf %388 : vector<8x128xf32> to vector<8x128xbf16>
    %c1_136 = arith.constant 1 : index
    %c0_137 = arith.constant 0 : index
    %c0_138 = arith.constant 0 : index
    %390 = vector.load %arg12[%c1_136, %c0_137, %c0_138] : memref<2x128x128xbf16, #tpu.memory_space<vmem>>, vector<1x128x128xbf16>
    %391 = vector.shape_cast %390 : vector<1x128x128xbf16> to vector<128x128xbf16>
    %cst_139 = arith.constant dense<0.000000e+00> : vector<8x128xf32>
    %392 = tpu.matmul %389, %391, %cst_139 {dimension_numbers = #tpu.dot_dimension_numbers<[1], [0], [0], [1], [0, 0, 1, 1], [], []>} : vector<8x128xbf16>, vector<128x128xbf16>, vector<8x128xf32> -> vector<8x128xf32>
    %c1_140 = arith.constant 1 : index
    %c0_141 = arith.constant 0 : index
    %c0_142 = arith.constant 0 : index
    %393 = vector.load %arg13[%c1_140, %c0_141, %c0_142] : memref<2x1x128xf32, #tpu.memory_space<vmem>>, vector<1x1x128xf32>
    %394 = vector.shape_cast %393 : vector<1x1x128xf32> to vector<1x128xf32>
    %395 = vector.broadcast %394 : vector<1x128xf32> to vector<8x128xf32>
    %396 = arith.addf %392, %395 : vector<8x128xf32>
    %397 = arith.mulf %396, %396 : vector<8x128xf32>
    %398 = arith.mulf %396, %397 : vector<8x128xf32>
    %cst_143 = arith.constant 4.471500e-02 : f32
    %399 = vector.broadcast %cst_143 : f32 to vector<8x128xf32>
    %400 = arith.mulf %399, %398 : vector<8x128xf32>
    %401 = arith.addf %396, %400 : vector<8x128xf32>
    %cst_144 = arith.constant 0.797884583 : f32
    %402 = vector.broadcast %cst_144 : f32 to vector<8x128xf32>
    %403 = arith.mulf %402, %401 : vector<8x128xf32>
    %404 = math.tanh %403 : vector<8x128xf32>
    %cst_145 = arith.constant 1.000000e+00 : f32
    %405 = vector.broadcast %cst_145 : f32 to vector<8x128xf32>
    %406 = arith.addf %405, %404 : vector<8x128xf32>
    %cst_146 = arith.constant 5.000000e-01 : f32
    %407 = vector.broadcast %cst_146 : f32 to vector<8x128xf32>
    %408 = arith.mulf %407, %406 : vector<8x128xf32>
    %409 = arith.mulf %396, %408 : vector<8x128xf32>
    %410 = arith.truncf %409 : vector<8x128xf32> to vector<8x128xbf16>
    %c1_147 = arith.constant 1 : index
    %c0_148 = arith.constant 0 : index
    %c0_149 = arith.constant 0 : index
    %411 = vector.load %arg14[%c1_147, %c0_148, %c0_149] : memref<2x128x128xbf16, #tpu.memory_space<vmem>>, vector<1x128x128xbf16>
    %412 = vector.shape_cast %411 : vector<1x128x128xbf16> to vector<128x128xbf16>
    %cst_150 = arith.constant dense<0.000000e+00> : vector<8x128xf32>
    %413 = tpu.matmul %410, %412, %cst_150 {dimension_numbers = #tpu.dot_dimension_numbers<[1], [0], [0], [1], [0, 0, 1, 1], [], []>} : vector<8x128xbf16>, vector<128x128xbf16>, vector<8x128xf32> -> vector<8x128xf32>
    %c1_151 = arith.constant 1 : index
    %c0_152 = arith.constant 0 : index
    %c0_153 = arith.constant 0 : index
    %414 = vector.load %arg15[%c1_151, %c0_152, %c0_153] : memref<2x1x128xf32, #tpu.memory_space<vmem>>, vector<1x1x128xf32>
    %415 = vector.shape_cast %414 : vector<1x1x128xf32> to vector<1x128xf32>
    %416 = vector.broadcast %415 : vector<1x128xf32> to vector<8x128xf32>
    %417 = arith.addf %413, %416 : vector<8x128xf32>
    %418 = arith.addf %417, %388 : vector<8x128xf32>
    %c1_154 = arith.constant 1 : index
    %c0_155 = arith.constant 0 : index
    %c0_156 = arith.constant 0 : index
    %419 = vector.load %arg16[%c1_154, %c0_155, %c0_156] : memref<2x1x128xf32, #tpu.memory_space<vmem>>, vector<1x1x128xf32>
    %420 = vector.shape_cast %419 : vector<1x1x128xf32> to vector<1x128xf32>
    %c1_157 = arith.constant 1 : index
    %c0_158 = arith.constant 0 : index
    %c0_159 = arith.constant 0 : index
    %421 = vector.load %arg17[%c1_157, %c0_158, %c0_159] : memref<2x1x128xf32, #tpu.memory_space<vmem>>, vector<1x1x128xf32>
    %422 = vector.shape_cast %421 : vector<1x1x128xf32> to vector<1x128xf32>
    %cst_160 = arith.constant dense<0.000000e+00> : vector<8xf32>
    %423 = vector.multi_reduction <add>, %418, %cst_160 [1] : vector<8x128xf32> to vector<8xf32>
    %424 = vector.shape_cast %423 : vector<8xf32> to vector<8x1xf32>
    %cst_161 = arith.constant 3.125000e-02 : f32
    %425 = vector.broadcast %cst_161 : f32 to vector<8x1xf32>
    %426 = arith.mulf %424, %425 : vector<8x1xf32>
    %427 = vector.broadcast %426 : vector<8x1xf32> to vector<8x128xf32>
    %428 = arith.subf %418, %427 : vector<8x128xf32>
    %429 = vector.broadcast %4 : vector<1x128xf32> to vector<8x128xf32>
    %430 = arith.mulf %428, %429 : vector<8x128xf32>
    %431 = arith.mulf %430, %430 : vector<8x128xf32>
    %cst_162 = arith.constant dense<0.000000e+00> : vector<8xf32>
    %432 = vector.multi_reduction <add>, %431, %cst_162 [1] : vector<8x128xf32> to vector<8xf32>
    %433 = vector.shape_cast %432 : vector<8xf32> to vector<8x1xf32>
    %cst_163 = arith.constant 3.125000e-02 : f32
    %434 = vector.broadcast %cst_163 : f32 to vector<8x1xf32>
    %435 = arith.mulf %433, %434 : vector<8x1xf32>
    %cst_164 = arith.constant 9.99999996E-13 : f32
    %436 = vector.broadcast %cst_164 : f32 to vector<8x1xf32>
    %437 = arith.addf %435, %436 : vector<8x1xf32>
    %438 = math.rsqrt %437 : vector<8x1xf32>
    %439 = vector.broadcast %438 : vector<8x1xf32> to vector<8x128xf32>
    %440 = arith.mulf %430, %439 : vector<8x128xf32>
    %441 = vector.broadcast %420 : vector<1x128xf32> to vector<8x128xf32>
    %442 = arith.mulf %440, %441 : vector<8x128xf32>
    %443 = vector.broadcast %422 : vector<1x128xf32> to vector<8x128xf32>
    %444 = arith.addf %442, %443 : vector<8x128xf32>
    %445 = arith.truncf %444 : vector<8x128xf32> to vector<8x128xbf16>
    %c0_165 = arith.constant 0 : index
    %c0_166 = arith.constant 0 : index
    %446 = vector.load %arg18[%c0_165, %c0_166] : memref<128x128xbf16, #tpu.memory_space<vmem>>, vector<128x128xbf16>
    %cst_167 = arith.constant dense<0.000000e+00> : vector<8x128xf32>
    %447 = tpu.matmul %445, %446, %cst_167 {dimension_numbers = #tpu.dot_dimension_numbers<[1], [0], [0], [1], [0, 0, 1, 1], [], []>} : vector<8x128xbf16>, vector<128x128xbf16>, vector<8x128xf32> -> vector<8x128xf32>
    %c0_168 = arith.constant 0 : index
    %c0_169 = arith.constant 0 : index
    %448 = vector.load %arg19[%c0_168, %c0_169] : memref<1x128xf32, #tpu.memory_space<vmem>>, vector<1x128xf32>
    %449 = vector.broadcast %448 : vector<1x128xf32> to vector<8x128xf32>
    %450 = arith.addf %447, %449 : vector<8x128xf32>
    %c0_170 = arith.constant 0 : index
    %c0_171 = arith.constant 0 : index
    %451 = vector.load %arg20[%c0_170, %c0_171] : memref<8x128xf32, #tpu.memory_space<vmem>>, vector<8x128xf32>
    tpu.vector_store %arg20[%c0_170, %c0_171], %450 {strides = array<i32>} : memref<8x128xf32, #tpu.memory_space<vmem>>, vector<8x128xf32>,
    return
  }
  func.func @transform_0(%arg0: i32) -> (i32, i32) {
    %c0_i32 = arith.constant 0 : i32
    %c0_i32_0 = arith.constant 0 : i32
    return %arg0, %c0_i32 : i32, i32
  }
  func.func @transform_1(%arg0: i32) -> (i32, i32, i32) {
    %c0_i32 = arith.constant 0 : i32
    %c0_i32_0 = arith.constant 0 : i32
    %c0_i32_1 = arith.constant 0 : i32
    return %arg0, %c0_i32, %c0_i32_0 : i32, i32, i32
  }
  func.func @transform_2(%arg0: i32) -> (i32, i32) {
    %c0_i32 = arith.constant 0 : i32
    %c0_i32_0 = arith.constant 0 : i32
    %c0_i32_1 = arith.constant 0 : i32
    return %c0_i32, %c0_i32_0 : i32, i32
  }
  func.func @transform_3(%arg0: i32) -> (i32, i32) {
    %c0_i32 = arith.constant 0 : i32
    %c0_i32_0 = arith.constant 0 : i32
    %c0_i32_1 = arith.constant 0 : i32
    return %c0_i32, %c0_i32_0 : i32, i32
  }
  func.func @transform_4(%arg0: i32) -> (i32, i32) {
    %c0_i32 = arith.constant 0 : i32
    %c0_i32_0 = arith.constant 0 : i32
    %c0_i32_1 = arith.constant 0 : i32
    return %c0_i32, %c0_i32_0 : i32, i32
  }
  func.func @transform_5(%arg0: i32) -> (i32, i32, i32) {
    %c0_i32 = arith.constant 0 : i32
    %c0_i32_0 = arith.constant 0 : i32
    %c0_i32_1 = arith.constant 0 : i32
    %c0_i32_2 = arith.constant 0 : i32
    return %c0_i32, %c0_i32_0, %c0_i32_1 : i32, i32, i32
  }
  func.func @transform_6(%arg0: i32) -> (i32, i32, i32) {
    %c0_i32 = arith.constant 0 : i32
    %c0_i32_0 = arith.constant 0 : i32
    %c0_i32_1 = arith.constant 0 : i32
    %c0_i32_2 = arith.constant 0 : i32
    return %c0_i32, %c0_i32_0, %c0_i32_1 : i32, i32, i32
  }
  func.func @transform_7(%arg0: i32) -> (i32, i32, i32) {
    %c0_i32 = arith.constant 0 : i32
    %c0_i32_0 = arith.constant 0 : i32
    %c0_i32_1 = arith.constant 0 : i32
    %c0_i32_2 = arith.constant 0 : i32
    return %c0_i32, %c0_i32_0, %c0_i32_1 : i32, i32, i32
  }
  func.func @transform_8(%arg0: i32) -> (i32, i32, i32) {
    %c0_i32 = arith.constant 0 : i32
    %c0_i32_0 = arith.constant 0 : i32
    %c0_i32_1 = arith.constant 0 : i32
    %c0_i32_2 = arith.constant 0 : i32
    return %c0_i32, %c0_i32_0, %c0_i32_1 : i32, i32, i32
  }
  func.func @transform_9(%arg0: i32) -> (i32, i32, i32) {
    %c0_i32 = arith.constant 0 : i32
    %c0_i32_0 = arith.constant 0 : i32
    %c0_i32_1 = arith.constant 0 : i32
    %c0_i32_2 = arith.constant 0 : i32
    return %c0_i32, %c0_i32_0, %c0_i32_1 : i32, i32, i32
  }
  func.func @transform_10(%arg0: i32) -> (i32, i32, i32) {
    %c0_i32 = arith.constant 0 : i32
    %c0_i32_0 = arith.constant 0 : i32
    %c0_i32_1 = arith.constant 0 : i32
    %c0_i32_2 = arith.constant 0 : i32
    return %c0_i32, %c0_i32_0, %c0_i32_1 : i32, i32, i32
  }
  func.func @transform_11(%arg0: i32) -> (i32, i32, i32) {
    %c0_i32 = arith.constant 0 : i32
    %c0_i32_0 = arith.constant 0 : i32
    %c0_i32_1 = arith.constant 0 : i32
    %c0_i32_2 = arith.constant 0 : i32
    return %c0_i32, %c0_i32_0, %c0_i32_1 : i32, i32, i32
  }
  func.func @transform_12(%arg0: i32) -> (i32, i32, i32) {
    %c0_i32 = arith.constant 0 : i32
    %c0_i32_0 = arith.constant 0 : i32
    %c0_i32_1 = arith.constant 0 : i32
    %c0_i32_2 = arith.constant 0 : i32
    return %c0_i32, %c0_i32_0, %c0_i32_1 : i32, i32, i32
  }
  func.func @transform_13(%arg0: i32) -> (i32, i32, i32) {
    %c0_i32 = arith.constant 0 : i32
    %c0_i32_0 = arith.constant 0 : i32
    %c0_i32_1 = arith.constant 0 : i32
    %c0_i32_2 = arith.constant 0 : i32
    return %c0_i32, %c0_i32_0, %c0_i32_1 : i32, i32, i32
  }
  func.func @transform_14(%arg0: i32) -> (i32, i32, i32) {
    %c0_i32 = arith.constant 0 : i32
    %c0_i32_0 = arith.constant 0 : i32
    %c0_i32_1 = arith.constant 0 : i32
    %c0_i32_2 = arith.constant 0 : i32
    return %c0_i32, %c0_i32_0, %c0_i32_1 : i32, i32, i32
  }
  func.func @transform_15(%arg0: i32) -> (i32, i32, i32) {
    %c0_i32 = arith.constant 0 : i32
    %c0_i32_0 = arith.constant 0 : i32
    %c0_i32_1 = arith.constant 0 : i32
    %c0_i32_2 = arith.constant 0 : i32
    return %c0_i32, %c0_i32_0, %c0_i32_1 : i32, i32, i32
  }
  func.func @transform_16(%arg0: i32) -> (i32, i32, i32) {
    %c0_i32 = arith.constant 0 : i32
    %c0_i32_0 = arith.constant 0 : i32
    %c0_i32_1 = arith.constant 0 : i32
    %c0_i32_2 = arith.constant 0 : i32
    return %c0_i32, %c0_i32_0, %c0_i32_1 : i32, i32, i32
  }
  func.func @transform_17(%arg0: i32) -> (i32, i32) {
    %c0_i32 = arith.constant 0 : i32
    %c0_i32_0 = arith.constant 0 : i32
    %c0_i32_1 = arith.constant 0 : i32
    return %c0_i32, %c0_i32_0 : i32, i32
  }
  func.func @transform_18(%arg0: i32) -> (i32, i32) {
    %c0_i32 = arith.constant 0 : i32
    %c0_i32_0 = arith.constant 0 : i32
    %c0_i32_1 = arith.constant 0 : i32
    return %c0_i32, %c0_i32_0 : i32, i32
  }
  func.func @transform_19(%arg0: i32) -> (i32, i32) {
    %c0_i32 = arith.constant 0 : i32
    %c0_i32_0 = arith.constant 0 : i32
    return %arg0, %c0_i32 : i32, i32
  }
}

</mosaic_0001>

<bundles_post_ra>
// kernel: tpu_custom_call.1
= control target key start
LH: loop header
LB: loop body
LE: loop exit
PB: predicated region body
PF: predicated region fallthrough
CT: control target
= control target key end

     0   :  { %s4326_s0 = inlined_call_operand.hbm [shape: f32[16,128], index: 0, kind: input, shape index: {}]   ;;  %s4327_s1 = inlined_call_operand.hbm [shape: f32[2,1,8], index: 1, kind: input, shape index: {}]   ;;  %s4328_s2 = inlined_call_operand.hbm [shape: f32[8,8], index: 2, kind: input, shape index: {}]   ;;  %s4329_s3 = inlined_call_operand.hbm [shape: f32[1,128], index: 3, kind: input, shape index: {}]   ;;  %s4330_s4 = inlined_call_operand.hbm [shape: f32[1,128], index: 4, kind: input, shape index: {}]   ;;  %s4331_s5 = inlined_call_operand.hbm [shape: bf16[2,128,384], index: 5, kind: input, shape index: {}]   ;;  %s4332_s6 = inlined_call_operand.hbm [shape: f32[2,1,384], index: 6, kind: input, shape index: {}]   ;;  %s4333_s7 = inlined_call_operand.hbm [shape: bf16[2,128,128], index: 7, kind: input, shape index: {}]   ;;  %s4334_s8 = inlined_call_operand.vmem [shape: f32[2,1,128], index: 8, kind: input, shape index: {}]   ;;  %s4335_s9 = inlined_call_operand.vmem [shape: f32[2,1,128], index: 9, kind: input, shape index: {}]   ;;  %s4336_s10 = inlined_call_operand.vmem [shape: f32[2,1,128], index: 10, kind: input, shape index: {}]   ;;  %s4337_s11 = inlined_call_operand.hbm [shape: bf16[2,128,128], index: 11, kind: input, shape index: {}]   ;;  %s4338_s12 = inlined_call_operand.vmem [shape: f32[2,1,128], index: 12, kind: input, shape index: {}]   ;;  %s4339_s13 = inlined_call_operand.hbm [shape: bf16[2,128,128], index: 13, kind: input, shape index: {}]   ;;  %s4340_s14 = inlined_call_operand.vmem [shape: f32[2,1,128], index: 14, kind: input, shape index: {}]   ;;  %s4341_s15 = inlined_call_operand.vmem [shape: f32[2,1,128], index: 15, kind: input, shape index: {}]   ;;  %s4342_s16 = inlined_call_operand.vmem [shape: f32[2,1,128], index: 16, kind: input, shape index: {}]   ;;  %s4343_s17 = inlined_call_operand.hbm [shape: bf16[128,128], index: 17, kind: input, shape index: {}]   ;;  %s4344_s18 = inlined_call_operand.vmem [shape: f32[1,128], index: 18, kind: input, shape index: {}]   ;;  %s4345_s19 = inlined_call_operand.hbm [shape: f32[16,128], index: 19, kind: output, shape index: {}]  }
   0x1   :  { %4356 = sst [smem:[#allocation32_spill]] %s4326_s0 }
   0x2   :  { %4357 = sst [smem:[#allocation33_spill]] %s4327_s1 }
   0x3   :  { %4358 = sst [smem:[#allocation34_spill]] %s4328_s2 }
   0x4   :  { %4359 = sst [smem:[#allocation35_spill]] %s4329_s3 }
   0x5   :  { %4360 = sst [smem:[#allocation36_spill]] %s4330_s4 }
   0x6   :  { %4361 = sst [smem:[#allocation37_spill]] %s4331_s5 }
   0x7   :  { %4362 = sst [smem:[#allocation38_spill]] %s4332_s6 }
   0x8   :  { %4363 = sst [smem:[#allocation39_spill]] %s4333_s7 }
   0x9   :  { %4364 = sst [smem:[#allocation40_spill]] %s4337_s11 }
   0xa   :  { %4365 = sst [smem:[#allocation41_spill]] %s4338_s12 }
   0xb   :  { %4366 = sst [smem:[#allocation42_spill]] %s4339_s13 }
   0xc   :  { %4367 = sst [smem:[#allocation43_spill]] %s4340_s14 }
   0xd   :  { %4368 = sst [smem:[#allocation44_spill]] %s4341_s15 }
   0xe   :  { %4369 = sst [smem:[#allocation45_spill]] %s4342_s16 }
   0xf   :  { %4370 = sst [smem:[#allocation46_spill]] %s4343_s17 }
  0x10   :  { %4371 = sst [smem:[#allocation47_spill]] %s4344_s18 }
  0x11   :  { %4372 = sst [smem:[#allocation48_spill]] %s4345_s19 }
  0x12   :  { %24 = vsyncpa [#allocation3], 0 }
  0x13   :  { %26 = vsyncpa [#allocation3 + $0x1], 0 }
  0x14   :  { %27 = vsyncpa [#allocation6], 0 }
  0x15   :  { %29 = vsyncpa [#allocation6 + $0x1], 0 }
  0x16   :  { %30 = vsyncpa [#allocation9], 0 }
  0x17   :  { %31 = vsyncpa [#allocation12], 0 }
  0x18   :  { %32 = vsyncpa [#allocation15], 0 }
  0x19   :  { %33 = vsyncpa [#allocation18], 0 }
  0x1a   :  { %34 = vsyncpa [#allocation4], 0 }
  0x1b   :  { %36 = vsyncpa [#allocation4 + $0x1], 0  ;;  %s3897_s0 = smov 0   ;;  %s3899_s30 = smov 0  }
  0x1c   :  { %s3901_s20 = smov 0   ;;  %s3903_s21 = smov 0  }
  0x1d LB: > { %4373 = sst [smem:[#allocation29_spill]] %s3775_s20  ;;  %s3921_s24 = sadd.s32 4294967295, %s3779_s21   ;;  %s3779_s21 = sphi %s3903_s21, %s4401_s21   ;;  %s3775_s20 = sphi %s3901_s20, %s4403_s20   ;;  %s3771_s30 = sphi %s3899_s30, %s4405_s30   ;;  %s3767_s0 = sphi %s3897_s0, %s4404_s0  }
  0x1e   : > { %s4374_s2 = sld [smem:[#allocation34_spill]]  ;;  %p2578_p0 = scmp.ge.s32.totalorder %s3779_s21, 1 }
  0x1f   : > { %p63_p1 = scmp.eq.s32.totalorder %s3921_s24, 0  ;;  %p482_p2 = scmp.lt.s32.totalorder %s3779_s21, 3 }
  0x20   : > { %s3781_s3 = smov [#allocation7]   ;;  %s4376_s29 = sld [smem:[#allocation35_spill]] }
  0x21   : > { %p3926_p3 = pnand %p2578_p0, %p482_p2  ;;  %s496_s26 = sshll.u32 %s3781_s3, 4  ;;  %s497_s26 = int_to_ptr.vmem [resolvable:$true] %s496_s26 }
  0x22   : > { %s4378_s5 = sld [smem:[#allocation37_spill]]  ;;  %s3783_s27 = smov [#allocation11]  }
  0x23   : > { %p3189_p5 = pneg %p3926_p3  ;;  %s531_s28 = sshll.u32 %s3783_s27, 4  ;;  %s532_s28 = int_to_ptr.vmem [resolvable:$true] %s531_s28 }
  0x24   : > { %s494_s23 = sshll.u32 %s4374_s2, 4  ;;  %s3782_s2 = smov [#allocation8]   ;;  %s495_s23 = int_to_ptr.hbm [resolvable:$true] %s494_s23 }
  0x25   : > { %p3938_p6 = pnand %p3189_p5, %p63_p1  ;;  %s508_s18 = sshll.u32 %s3782_s2, 4  ;;  %s509_s18 = int_to_ptr.vmem [resolvable:$true] %s508_s18 }
  0x26   : > { %s506_s1 = sshll.u32 %s4376_s29, 4  ;;  %s4379_s7 = sld [smem:[#allocation39_spill]]  ;;  %s507_s1 = int_to_ptr.hbm [resolvable:$true] %s506_s1 }
  0x27   : > { %3192 = dma.hbm_to_vmem [thread:$0]  (!%p3938_p6), %s495_s23, 128, %s497_s26, [#allocation6]  }
  0x28   : > { %s529_s16 = sshll.u32 %s4378_s5, 4  ;;  %s3784_s12 = smov 192   ;;  %s530_s16 = int_to_ptr.hbm [resolvable:$true] %s529_s16 }
  0x29   : > { %3195 = dma.hbm_to_vmem [thread:$0]  (!%p3938_p6), %s507_s1, 16, %s509_s18, [#allocation9]  }
  0x2a   : > { %s3785_s2 = smov 12   ;;  %s3786_s19 = smov [#allocation14]  }
  0x2b   : > { %3201 = dma.hbm_to_vmem [thread:$0]  (!%p3938_p6), %s530_s16, 6144, %s532_s28, [#allocation12], %s3784_s12, %s3784_s12, %s3785_s2  }
  0x2c   : > { %s557_s14 = sshll.u32 %s4379_s7, 4  ;;  %s559_s3 = sshll.u32 %s3786_s19, 4  ;;  %s558_s14 = int_to_ptr.hbm [resolvable:$true] %s557_s14  ;;  %s560_s3 = int_to_ptr.vmem [resolvable:$true] %s559_s3 }
  0x2d   : > { %s3787_s5 = smov 64   ;;  %s3788_s23 = smov 4  }
  0x2e   : > { %3207 = dma.hbm_to_vmem [thread:$0]  (!%p3938_p6), %s558_s14, 2048, %s560_s3, [#allocation15], %s3787_s5, %s3787_s5, %s3788_s23  }
  0x2f   : > { %s4380_s13 = sld [smem:[#allocation42_spill]]  ;;  %s3789_s1 = smov [#allocation17]  }
  0x30   : > { %s599_s27 = sshll.u32 %s3789_s1, 4  ;;  %s4381_s4 = sld [smem:[#allocation36_spill]]  ;;  %s600_s27 = int_to_ptr.vmem [resolvable:$true] %s599_s27 }
  0x31   : > { %s3790_s14 = smov [#allocation10]   ;;  %s4382_s6 = sld [smem:[#allocation38_spill]] }
  0x32   : > { %s520_s29 = sshll.u32 %s3790_s14, 4  ;;  %s3791_s18 = smov [#allocation13]   ;;  %s521_s29 = int_to_ptr.vmem [resolvable:$true] %s520_s29 }
  0x33   : > { %s545_s15 = sshll.u32 %s3791_s18, 4  ;;  %s4383_s11 = sld [smem:[#allocation40_spill]]  ;;  %s546_s15 = int_to_ptr.vmem [resolvable:$true] %s545_s15 }
  0x34   : > { %s3793_s16 = smov 3   ;;  %s4384_s17 = sld [smem:[#allocation46_spill]] }
  0x35   : > { %s597_s26 = sshll.u32 %s4380_s13, 4  ;;  %s3995_s1 = sadd.s32 1, %s3779_s21   ;;  %s598_s26 = int_to_ptr.hbm [resolvable:$true] %s597_s26 }
  0x36   : > { %s518_s28 = sshll.u32 %s4381_s4, 4  ;;  %4385 = sst [smem:[#allocation30_spill]] %s3995_s1  ;;  %s519_s28 = int_to_ptr.hbm [resolvable:$true] %s518_s28 }
  0x37   : > { %3213 = dma.hbm_to_vmem [thread:$0]  (!%p3938_p6), %s598_s26, 2048, %s600_s27, [#allocation18], %s3787_s5, %s3787_s5, %s3788_s23  }
  0x38   : > { %s543_s3 = sshll.u32 %s4382_s6, 4  ;;  %s3792_s27 = smov 48   ;;  %s544_s3 = int_to_ptr.hbm [resolvable:$true] %s543_s3 }
  0x39   : > { %3198 = dma.hbm_to_vmem [thread:$0]  (!%p3938_p6), %s519_s28, 16, %s521_s29, [#allocation9]  }
  0x3a   : > { %s580_s26 = sshll.u32 %s4383_s11, 4  ;;  %s3794_s28 = smov [#allocation16]   ;;  %s581_s26 = int_to_ptr.hbm [resolvable:$true] %s580_s26 }
  0x3b   : > { %3204 = dma.hbm_to_vmem [thread:$0]  (!%p3938_p6), %s544_s3, 96, %s546_s15, [#allocation12], %s3792_s27, %s3792_s27, %s3793_s16  }
  0x3c   : > { %s582_s14 = sshll.u32 %s3794_s28, 4  ;;  %s620_s19 = sshll.u32 %s4384_s17, 4  ;;  %s583_s14 = int_to_ptr.vmem [resolvable:$true] %s582_s14  ;;  %s621_s19 = int_to_ptr.hbm [resolvable:$true] %s620_s19 }
  0x3d   : > { %3210 = dma.hbm_to_vmem [thread:$0]  (!%p3938_p6), %s581_s26, 2048, %s583_s14, [#allocation15], %s3787_s5, %s3787_s5, %s3788_s23  }
  0x3e   : > { %s3795_s3 = smov [#allocation19]   ;;  %s2577_s15 = sadd.s32 4294967294, %s3779_s21  }
  0x3f   : > { %s622_s18 = sshll.u32 %s3795_s3, 4  ;;  %s49_s12 = sadd.s32 1, %s3775_s20  ;;  %s623_s18 = int_to_ptr.vmem [resolvable:$true] %s622_s18 }
  0x40   : > { %3216 = dma.hbm_to_vmem [thread:$0]  (!%p3938_p6), %s621_s19, 1024, %s623_s18, [#allocation18], %s3787_s5, %s3787_s5, %s3788_s23  }
  0x41   : > { %s46_s27 = ssub.s32 %s3779_s21, %s3995_s1  ;;  %p56_p7 = scmp.ne.s32.totalorder %s3775_s20, %s3771_s30 }
  0x42   : > { %p47_p8 = scmp.eq.s32.totalorder %s46_s27, 0  ;;  %p57_p9 = scmp.eq.s32.totalorder %s3779_s21, 0 }
  0x43   : > { %p62_p10 = scmp.ne.s32.totalorder %s3771_s30, %s3767_s0  ;;  %p469_p11 = scmp.eq.s32.totalorder %s3921_s24, 1 }
  0x44   : > { %s4007_s26 = scalar_select %p47_p8, %s3775_s20, %s49_s12  }
  0x45   : > { %p4009_p12 = por %p57_p9, %p56_p7  ;;  %p4015_p13 = por %p63_p1, %p62_p10 }
  0x46   : > { %4386 = sst [smem:[#allocation31_spill]] %s4007_s26  ;;  %p4019_p0 = por %p469_p11, %p56_p7 }
  0x47   : > { %p475_p2 = scmp.eq.s32.totalorder %s2577_s15, 1  ;;  %p3237_p5 = scmp.lt.s32.totalorder %s3779_s21, 2 }
  0x48   : > { %s4025_s16 = sand.u32 1, %s3775_s20   ;;  %s2590_s29 = sshll.u32 %s3779_s21, 3 }
  0x49   : > { %p4027_p6 = por %p475_p2, %p62_p10  ;;  %s2589_s14 = sshll.u32 %s4025_s16, 3 }
  0x4a   : > { %s4391_s3 = sld [smem:[#allocation32_spill]]  ;;  %s643_s27 = scalar_lea.vmem [#allocation2], %s2589_s14 }
  0x4b   : > { %s651_s4 = sshll.u32 %s643_s27, 4  ;;  %p4038_p7 = pnand %p3237_p5, %p4009_p12  ;;  %s652_s4 = int_to_ptr.vmem [resolvable:$true] %s651_s4 }
  0x4c   : > { %s658_s6 = sand.u32 1, %s3779_s21   ;;  %s4393_s13 = sld [smem:[#allocation33_spill]] }
  0x4d   : > { %s640_s26 = scalar_lea.sflag [#allocation3], %s4025_s16  ;;  %p3633_p9 = pneg %p4038_p7 }
  0x50   : > { %s647_s18 = scalar_lea.hbm %s4391_s3, %s2590_s29  ;;  %s3636_s19 = scalar_lea.hbm %s4391_s3, 16 }
  0x51   : > { %s649_s12 = sshll.u32 %s647_s18, 4  ;;  %s650_s12 = int_to_ptr.hbm [resolvable:$true] %s649_s12 }
  0x52   : > { %s664_s17 = scalar_lea.hbm %s4393_s13, %s3779_s21  ;;  %s3629_s2 = sshra.s32 %s650_s12, 4  ;;  %s3630_s2 = int_to_ptr.hbm [resolvable:$true] %s3629_s2 }
  0x53   : > { %s3631_s29 = scalar_lea.hbm %s3630_s2, 8  ;;  %p3637_p12 = scmp.lt.s32.totalorder %s3630_s2, %s4391_s3 }
  0x54   : > { %p3632_p8 = scmp.ne.s32.totalorder %s3630_s2, %s3631_s29  ;;  %p3638_p2 = scmp.lt.s32.totalorder %s3636_s19, %s3631_s29 }
  0x56   : > { %p3634_p10 = pnand %p3633_p9, %p3632_p8  ;;  %p3639_p5 = por %p3638_p2, %p3637_p12 }
  0x58   : > { %p3635_p11 = pneg %p3634_p10 }
  0x5a   : > { %p3640_p4 = pnand %p3639_p5, %p3635_p11 }
  0x5c   : > { %3643 = shalt.err (!%p3640_p4)
}
  0x5d   : > { %3220 = dma.hbm_to_vmem [thread:$0]  (!%p4038_p7), %s650_s12, 128, %s652_s4, %s640_s26  }
  0x5e   : > { %s666_s7 = sshll.u32 %s664_s17, 4  ;;  %s661_s11 = scalar_lea.vmem [#allocation5], %s4025_s16  ;;  %s667_s7 = int_to_ptr.hbm [resolvable:$true] %s666_s7 }
  0x5f   : > { %s668_s20 = sshll.u32 %s661_s11, 4  ;;  %s659_s22 = scalar_lea.sflag [#allocation6], %s658_s6  ;;  %s669_s20 = int_to_ptr.vmem [resolvable:$true] %s668_s20 }
  0x60   : > { %s3659_s14 = sshra.s32 %s667_s7, 4  ;;  %s3666_s19 = scalar_lea.hbm %s4393_s13, 2  ;;  %s3660_s14 = int_to_ptr.hbm [resolvable:$true] %s3659_s14 }
  0x61   : > { %s3661_s1 = scalar_lea.hbm %s3660_s14, 1  ;;  %p3667_p4 = scmp.lt.s32.totalorder %s3660_s14, %s4393_s13 }
  0x62   : > { %p3662_p8 = scmp.ne.s32.totalorder %s3660_s14, %s3661_s1  ;;  %p3668_p12 = scmp.lt.s32.totalorder %s3666_s19, %s3661_s1 }
  0x64   : > { %p3664_p10 = pnand %p3662_p8, %p3633_p9  ;;  %p3669_p2 = por %p3668_p12, %p3667_p4 }
  0x66   : > { %p3665_p11 = pneg %p3664_p10 }
  0x68   : > { %p3670_p5 = pnand %p3669_p2, %p3665_p11 }
  0x6a   : > { %3673 = shalt.err (!%p3670_p5)
}
  0x6b   : > { %3223 = dma.hbm_to_vmem [thread:$0]  (!%p4038_p7), %s667_s7, 16, %s669_s20, %s659_s22  }
  0x6c   : > { %677 = sbr.rel (%p3926_p3) target bundleno = 4234 (0x108a), region = 96  ;;  %s4076_s6 = sand.u32 (!%p3926_p3), 1, %s3771_s30  }
  0x6d   : > { %s2592_s17 = sshll.u32 (!%p3926_p3), %s4076_s6, 3  ;;  %s680_s26 = scalar_lea.sflag (!%p3926_p3), [#allocation3], %s4076_s6 }
  0x6e   : > { %s683_s1 = scalar_lea.vmem (!%p3926_p3), [#allocation2], %s2592_s17 }
  0x71   : > { %3734 = dma.done.wait (%p4015_p13), %s680_s26, 128  }
  0x72   : > { %3736 = vsyncadd (%p4015_p13), %s680_s26, 4294967168  ;;  %s689_s20 = sand.u32 1, %s3921_s24   ;;  %s692_s16 = scalar_lea.vmem [#allocation5], %s4076_s6 }
  0x73   : > { %s690_s25 = scalar_lea.sflag [#allocation6], %s689_s20 }
  0x74   : > { %3738 = dma.done.wait (%p4015_p13), %s690_s25, 16  }
  0x75   : > { %3740 = vsyncadd (%p4015_p13), %s690_s25, 4294967280 }
  0x76   : > { %3742 = dma.done.wait (%p63_p1), [#allocation6], 128  }
  0x77   : > { %3744 = vsyncadd (%p63_p1), [#allocation6], 4294967168 }
  0x78   : > { %3746 = dma.done.wait (%p63_p1), [#allocation9], 32  }
  0x79   : > { %3748 = vsyncadd (%p63_p1), [#allocation9], 4294967264 }
  0x7a   : > { %3750 = dma.done.wait (%p63_p1), [#allocation12], 6240  }
  0x7b   : > { %3752 = vsyncadd (%p63_p1), [#allocation12], 4294961056 }
  0x7c   : > { %3754 = dma.done.wait (%p63_p1), [#allocation15], 4096  }
  0x7d   : > { %3756 = vsyncadd (%p63_p1), [#allocation15], 4294963200 }
  0x7e   : > { %3758 = dma.done.wait (%p63_p1), [#allocation18], 3072  }
  0x7f   : > { %3760 = vsyncadd (%p63_p1), [#allocation18], 4294964224  ;;  %v834_v0 = vld [vmem:[%s683_s1] sm:$0xff]  ;;  %v3065_v2 = vld [vmem:[#allocation11 + $0xb0] sm:$0xf0]  ;;  %v798_v10 = vlaneseq  ;;  %v3796_v14 = vmov 0.0  }
  0x80   : > { %837 = vadd.xlane.f32.xlu0 %v834_v0  ;;  %v2694_v1 = vld [vmem:[#allocation11 + $0xa8] sm:$0xf]  ;;  %v3064_v3 = vld [vmem:[#allocation11 + $0xac] sm:$0xf]  ;;  %v2696_v5 = vld [vmem:[#allocation11 + $0xb4] sm:$0xf0] }
  0x81   : > { %v2695_v4 = vor.u32 %v3065_v2, %v2694_v1  ;;  %v2702_v6 = vld [vmem:[#allocation11 + $0xb0] sm:$0xf]  ;;  %v3066_v7 = vld [vmem:[#allocation11 + $0xb8] sm:$0xf0]  ;;  %v2699_v8 = vor.u32 %v3064_v3, %v2696_v5  ;;  %v4112_v11 = vand.u32 127, %v798_v10  ;;  %vm1107_vm8 = vcmask 1043456  }
  0x82   : > { %v2703_v9 = vor.u32 %v3066_v7, %v2702_v6  ;;  %v2682_v19 = vld [vmem:[#allocation11 + $0x90] sm:$0xf]  ;;  %v3062_v20 = vld [vmem:[#allocation11 + $0x98] sm:$0xf0]  ;;  %v3061_v21 = vld [vmem:[#allocation11 + $0x94] sm:$0xf] }
  0x83   : > { %1035 = vmatpush.bf16.msra.mxu0 %v2695_v4  ;;  %1048 = vmatpush.bf16.msra.mxu1 %v2699_v8  ;;  %vm800_vm0 = vcmp.lt.s32.totalorder %v4112_v11, 32  ;;  %v2683_v22 = vor.u32 %v3062_v20, %v2682_v19  ;;  %v2684_v23 = vld [vmem:[#allocation11 + $0x9c] sm:$0xf0]  ;;  %v2690_v24 = vld [vmem:[#allocation11 + $0x98] sm:$0xf]  ;;  %vm813_vm4 = vcmp.ge.s32.totalorder %v4112_v11, 16 }
  0x84   : > { %1061 = vmatpush.bf16.msra.mxu2 %v2703_v9  ;;  %v4118_v15 = vsel %vm800_vm0, 1.0, %v3796_v14  ;;  %v3063_v25 = vld [vmem:[#allocation11 + $0xa0] sm:$0xf0]  ;;  %v2687_v26 = vor.u32 %v3061_v21, %v2684_v23  ;;  %v2670_v28 = vld [vmem:[#allocation11 + $0x78] sm:$0xf]  ;;  %vm814_vm5 = vcmp.lt.s32.totalorder %v4112_v11, 24 }
  0x85   : > { %v2691_v27 = vor.u32 %v3063_v25, %v2690_v24  ;;  %v3059_v29 = vld [vmem:[#allocation11 + $0x80] sm:$0xf0]  ;;  %v3058_v30 = vld [vmem:[#allocation11 + $0x7c] sm:$0xf]  ;;  %v2672_v32 = vld [vmem:[#allocation11 + $0x84] sm:$0xf0] }
  0x86   : > { %v2671_v31 = vor.u32 %v3059_v29, %v2670_v28  ;;  %v2678_v33 = vld [vmem:[#allocation11 + $0x80] sm:$0xf]  ;;  %v3060_v34 = vld [vmem:[#allocation11 + $0x88] sm:$0xf0]  ;;  %v2675_v35 = vor.u32 %v3058_v30, %v2672_v32  ;;  %v3055_v39 = vld [vmem:[#allocation11 + $0x64] sm:$0xf] }
  0x87   : > { %1036 = vmatpush.bf16.msra.mxu0 %v2683_v22  ;;  %1049 = vmatpush.bf16.msra.mxu1 %v2687_v26  ;;  %v2679_v36 = vor.u32 %v3060_v34, %v2678_v33  ;;  %v2658_v37 = vld [vmem:[#allocation11 + $0x60] sm:$0xf]  ;;  %v3056_v38 = vld [vmem:[#allocation11 + $0x68] sm:$0xf0]  ;;  %v2660_v41 = vld [vmem:[#allocation11 + $0x6c] sm:$0xf0] }
  0x88   : > { %1062 = vmatpush.bf16.msra.mxu2 %v2691_v27  ;;  %v2659_v40 = vor.u32 %v3056_v38, %v2658_v37  ;;  %v2666_v42 = vld [vmem:[#allocation11 + $0x68] sm:$0xf]  ;;  %v3057_v43 = vld [vmem:[#allocation11 + $0x70] sm:$0xf0]  ;;  %v2663_v44 = vor.u32 %v3055_v39, %v2660_v41  ;;  %v3052_v48 = vld [vmem:[#allocation11 + $0x4c] sm:$0xf] }
  0x89   : > { %v2667_v45 = vor.u32 %v3057_v43, %v2666_v42  ;;  %v2646_v46 = vld [vmem:[#allocation11 + $0x48] sm:$0xf]  ;;  %v3053_v47 = vld [vmem:[#allocation11 + $0x50] sm:$0xf0]  ;;  %v2648_v50 = vld [vmem:[#allocation11 + $0x54] sm:$0xf0] }
  0x8a   : > { %v2647_v49 = vor.u32 %v3053_v47, %v2646_v46  ;;  %v2654_v51 = vld [vmem:[#allocation11 + $0x50] sm:$0xf]  ;;  %v3054_v52 = vld [vmem:[#allocation11 + $0x58] sm:$0xf0]  ;;  %v2651_v53 = vor.u32 %v3052_v48, %v2648_v50  ;;  %v3049_v57 = vld [vmem:[#allocation11 + $0x34] sm:$0xf] }
  0x8b   : > { %1037 = vmatpush.bf16.msra.mxu0 %v2671_v31  ;;  %1050 = vmatpush.bf16.msra.mxu1 %v2675_v35  ;;  %v2655_v54 = vor.u32 %v3054_v52, %v2654_v51  ;;  %v2634_v55 = vld [vmem:[#allocation11 + $0x30] sm:$0xf]  ;;  %v3050_v56 = vld [vmem:[#allocation11 + $0x38] sm:$0xf0]  ;;  %v2636_v59 = vld [vmem:[#allocation11 + $0x3c] sm:$0xf0] }
  0x8c   : > { %1063 = vmatpush.bf16.msra.mxu2 %v2679_v36  ;;  %v2635_v58 = vor.u32 %v3050_v56, %v2634_v55  ;;  %v2642_v60 = vld [vmem:[#allocation11 + $0x38] sm:$0xf]  ;;  %v3051_v61 = vld [vmem:[#allocation11 + $0x40] sm:$0xf0]  ;;  %v2639_v62 = vor.u32 %v3049_v57, %v2636_v59  ;;  %v3046_v2 = vld [vmem:[#allocation11 + $0x1c] sm:$0xf] }
  0x8d   : > { %v2643_v63 = vor.u32 %v3051_v61, %v2642_v60  ;;  %v3047_v1 = vld [vmem:[#allocation11 + $0x20] sm:$0xf0]  ;;  %v2624_v4 = vld [vmem:[#allocation11 + $0x24] sm:$0xf0]  ;;  %v2630_v5 = vld [vmem:[#allocation11 + $0x20] sm:$0xf] }
  0x8e   : > { %v3048_v6 = vld [vmem:[#allocation11 + $0x28] sm:$0xf0]  ;;  %v2627_v7 = vor.u32 %v3046_v2, %v2624_v4  ;;  %v2610_v9 = vld [vmem:[#allocation11] sm:$0xf]  ;;  %v3045_v19 = vld [vmem:[#allocation11 + $0x10] sm:$0xf0] }
  0x8f   : > { %1038 = vmatpush.bf16.msra.mxu0 %v2659_v40  ;;  %1051 = vmatpush.bf16.msra.mxu1 %v2663_v44  ;;  %v2631_v8 = vor.u32 %v3048_v6, %v2630_v5  ;;  %v3044_v10 = vld [vmem:[#allocation11 + $0x8] sm:$0xf0]  ;;  %v3296_v31 = vld [vmem:[#allocation8] ss:$0 sm:$0xff]  ;;  %v3297_v34 = vld [vmem:[#allocation10] ss:$0 sm:$0xff] }
  0x90   : > { %1064 = vmatpush.bf16.msra.mxu2 %v2667_v45  ;;  %v899_v38 = vld [vmem:[#allocation13] sm:$0x7]  ;;  %vm804_vm6 = vcmp.lt.s32.totalorder %v4112_v11, 8  ;;  %vm815_vm7 = vmand %vm813_vm4, %vm814_vm5  ;;  %v826_v2 = vld [vmem:[#allocation7] sm:$0xff]  ;;  %vm1091_vm9 = vcmask 64512   ;;  %vm808_vm10 = vcmp.ge.s32.totalorder %v4112_v11, 8 }
  0x91   : > { %v902_v39 = vperm.slane %v899_v38, 1  ;;  %v4134_v40 = vsel %vm804_vm6, 1.0, %v3796_v14  ;;  %v4137_v41 = vsel %vm815_vm7, 1.0, %v3796_v14  ;;  %v827_v61 = vld [vmem:[%s692_s16] sm:$0x1]  ;;  %vm809_vm11 = vcmp.lt.s32.totalorder %v4112_v11, 16 }
  0x92   : > { %v4142_v46 = vmul.f32 0.35355338, %v4134_v40  ;;  %v4145_v47 = vmul.f32 0.35355338, %v4137_v41  ;;  %vm810_vm12 = vmand %vm808_vm10, %vm809_vm11  ;;  %vm818_vm13 = vcmp.ge.s32.totalorder %v4112_v11, 24  ;;  %s4394_s2 = sld [smem:[#allocation41_spill]] }
  0x93   : > { %1039 = vmatpush.bf16.msra.mxu0 %v2647_v49  ;;  %1052 = vmatpush.bf16.msra.mxu1 %v2651_v53  ;;  %v903_v49 = vperm.slane %v899_v38, 2  ;;  %vm819_vm14 = vmand %vm818_vm13, %vm800_vm0  ;;  %s4395_s18 = sld [smem:[#allocation43_spill]]  ;;  %s3040_s5 = sshll.u32 %s3921_s24, 3 }
  0x94   : > { %1065 = vmatpush.bf16.msra.mxu2 %v2655_v54  ;;  %s4396_s1 = sld [smem:[#allocation44_spill]]  ;;  %s796_s29 = scalar_lea.vmem [#allocation20], %s2592_s17 }
  0x95   : > { %s4397_s16 = sld [smem:[#allocation45_spill]]  ;;  %s2400_s19 = sshll.u32 %s796_s29, 4  ;;  %s2401_s19 = int_to_ptr.vmem [resolvable:$true] %s2400_s19 }
  0x96   : > { %s4398_s27 = sld [smem:[#allocation48_spill]]  ;;  %s2388_s26 = scalar_lea.sflag [#allocation4], %s4076_s6 }
  0x97   : > { %1040 = vmatpush.bf16.msra.mxu0 %v2635_v58  ;;  %1053 = vmatpush.bf16.msra.mxu1 %v2639_v62  ;;  %v828_v62 = vsub.f32 1.0, %v827_v61  ;;  %s4399_s14 = sld [smem:[#allocation47_spill]] }
  0x98   : > { %1066 = vmatpush.bf16.msra.mxu2 %v2643_v63 }
  0x99   : > { %v829_v63 = vmul.f32 -10000.0, %v828_v62 }
  0x9b   : > { %1054 = vmatpush.bf16.msra.mxu1 %v2627_v7 }
  0x9c   : > { %1067 = vmatpush.bf16.msra.mxu2 %v2631_v8  ;;  %s2398_s7 = scalar_lea.hbm %s4398_s27, %s3040_s5  ;;  %s3709_s12 = scalar_lea.hbm %s4398_s27, 16 }
  0x9d   : > { %s2402_s4 = sshll.u32 %s2398_s7, 4  ;;  %s2403_s4 = int_to_ptr.hbm [resolvable:$true] %s2402_s4 }
  0x9e   : > { %s3703_s24 = sshra.s32 %s2403_s4, 4  ;;  %s3704_s24 = int_to_ptr.hbm [resolvable:$true] %s3703_s24 }
  0x9f   : > { %s3705_s20 = scalar_lea.hbm %s3704_s24, 8  ;;  %p3710_p7 = scmp.lt.s32.totalorder %s3704_s24, %s4398_s27 }
  0xa0   : > { %p3706_p1 = scmp.ne.s32.totalorder %s3704_s24, %s3705_s20  ;;  %p3711_p9 = scmp.lt.s32.totalorder %s3709_s12, %s3705_s20 }
  0xa2   : > { %p3707_p3 = pnand %p3706_p1, %p4019_p0  ;;  %p3712_p8 = por %p3711_p9, %p3710_p7 }
  0xa4   : > { %p3708_p13 = pneg %p3707_p3 }
  0xa6   : > { %p3713_p10 = pnand %p3712_p8, %p3708_p13 }
  0xf3   : > { %v838_v12 = vpop.xlane.xlu0 %837 }
  0xf4   : > { %v839_v13 = vmul.f32 0.03125, %v838_v12  ;;  %v3043_v12 = vld [vmem:[#allocation11 + $0x4] sm:$0xf] }
  0xf6   : > { %v840_v16 = vsub.f32 %v834_v0, %v839_v13  ;;  %v2622_v0 = vld [vmem:[#allocation11 + $0x18] sm:$0xf]  ;;  %v2611_v13 = vor.u32 %v3044_v10, %v2610_v9 }
  0xf7   : > { %v2623_v3 = vor.u32 %v3047_v1, %v2622_v0  ;;  %v831_v1 = vperm.slane %v829_v63, 0 }
  0xf8   : > { %v4121_v17 = vmul.f32 %v4118_v15, %v840_v16  ;;  %v2612_v16 = vld [vmem:[#allocation11 + $0xc] sm:$0xf0] }
  0xf9   : > { %1041 = vmatpush.bf16.msra.mxu0 %v2623_v3  ;;  %v2615_v20 = vor.u32 %v3043_v12, %v2612_v16  ;;  %v4154_v3 = vadd.f32 %v831_v1, %v826_v2 }
  0xfa   : > { %v842_v18 = vmul.f32 %v4121_v17, %v4121_v17 }
  0xfb   : > { %1055 = vmatpush.bf16.msra.mxu1 %v2615_v20 }
  0xfc   : > { %843 = vadd.xlane.f32.xlu0 %v842_v18  ;;  %v2618_v18 = vld [vmem:[#allocation11 + $0x8] sm:$0xf] }
  0xfd   : > { %v2619_v21 = vor.u32 %v3045_v19, %v2618_v18  ;;  %1042 = vmatpush.bf16.msra.mxu0 %v2611_v13 }
  0xff   : > { %1068 = vmatpush.bf16.msra.mxu2 %v2619_v21 }
 0x16f   : > { %v844_v22 = vpop.xlane.xlu0 %843 }
 0x170   : > { %v845_v23 = vmul.f32 0.03125, %v844_v22  ;;  %v4163_v22 = vsel %vm810_vm12, 1.0, %v3796_v14 }
 0x172   : > { %v846_v24 = vadd.f32 1e-12, %v845_v23  ;;  %v4166_v23 = vmul.f32 0.35355338, %v4163_v22 }
 0x174   : > { %3313 = vrsqrt.f32 %v846_v24  ;;  %vm853_vm2 = vweird.f32 %v846_v24 }
 0x17a   : > { %v3314_v25 = vpop.eup %3313 }
 0x17b   : > { %v848_v26 = vmul.f32 %v3314_v25, %v846_v24  ;;  %vm854_vm1 = vweird.f32 %v3314_v25 }
 0x17c   : > { %vm855_vm3 = vmor %vm853_vm2, %vm854_vm1 }
 0x17d   : > { %v849_v27 = vmul.f32 %v3314_v25, %v848_v26  ;;  %v4174_v26 = vsel %vm819_vm14, 1.0, %v3796_v14 }
 0x17f   : > { %v850_v28 = vmul.f32 0.5, %v849_v27  ;;  %v4177_v27 = vmul.f32 0.35355338, %v4174_v26 }
 0x181   : > { %v851_v29 = vsub.f32 1.5, %v850_v28 }
 0x183   : > { %v852_v30 = vmul.f32 %v3314_v25, %v851_v29 }
 0x185   : > { %v856_v32 = vsel %vm855_vm3, %v3314_v25, %v852_v30 }
 0x186   : > { %v857_v33 = vmul.f32 %v856_v32, %v4121_v17  ;;  %v901_v17 = vperm.slane %v899_v38, 0 }
 0x188   : > { %v861_v35 = vmul.f32 %v3296_v31, %v857_v33 }
 0x18a   : > { %v4126_v36 = vadd.f32 %v3297_v34, %v861_v35 }
 0x18c   : > { %v866_v37 = vpack.c.bf16 %v4126_v36, %v4126_v36 }
 0x18e   : > { %1043 = vmatmul.bf16.vlgmr.msra.gmra.mxu0 %v866_v37  ;;  %1056 = vmatmul.bf16.vlgmr.msra.gmra.mxu1 %v866_v37 }
 0x18f   : > { %1069 = vmatmul.bf16.vlgmr.msra.gmra.mxu2 %v866_v37 }
 0x20b   : > { %v1044_v42 = vpop.f32.mrf.mxu0  ;;  %v1057_v43 = vpop.f32.mrf.mxu1 }
 0x20c   : > { %v1058_v44 = vadd.f32 %v1057_v43, %v902_v39  ;;  %v4139_v45 = vadd.f32 %v1044_v42, %v901_v17 }
 0x20e   : > { %v1074_v48 = vpack.c.bf16 %v1058_v44, %v1058_v44  ;;  %v1076_v50 = vmul.f32 %v4139_v45, %v4142_v46  ;;  %v1171_v51 = vmul.f32 %v4139_v45, %v4145_v47  ;;  %v1126_v24 = vmul.f32 %v4139_v45, %v4166_v23 }
 0x20f   : > { %v1216_v28 = vmul.f32 %v4139_v45, %v4177_v27 }
 0x210   : > { %1085 = vmatpush.bf16.xpose.msra.mxu3 %v1074_v48  ;;  %1180 = vmatpush.bf16.xpose.msrb.mxu1 %v1074_v48  ;;  %v1077_v57 = vpack.c.bf16 %v1076_v50, %v1076_v50  ;;  %v1172_v58 = vpack.c.bf16 %v1171_v51, %v1171_v51  ;;  %v1127_v25 = vpack.c.bf16 %v1126_v24, %v1126_v24 }
 0x211   : > { %v1217_v29 = vpack.c.bf16 %v1216_v28, %v1216_v28 }
 0x212   : > { %v1070_v52 = vpop.f32.mrf.mxu2 }
 0x213   : > { %v1071_v53 = vadd.f32 %v1070_v52, %v903_v49  ;;  %v1046_v54 = vpop.f32.mrf.mxu0  ;;  %v1059_v55 = vpop.f32.mrf.mxu1 }
 0x215   : > { %v1075_v56 = vpack.c.bf16 %v1071_v53, %v1071_v53 }
 0x217   : > { %v1109_v59 = vsel %vm1107_vm8, %v1075_v56, 0  ;;  %1086 = vmatmul.bf16.vlgmr.msra.gmra.mxu3 %v1077_v57  ;;  %1181 = vmatmul.bf16.vlgmr.msrb.gmra.mxu1 %v1172_v58 }
 0x218   : > { %1118 = vmatpush.bf16.msrb.mxu3 %v1109_v59  ;;  %1163 = vmatpush.bf16.msrb.mxu0 %v1109_v59 }
 0x219   : > { %1208 = vmatpush.bf16.msrb.mxu2 %v1109_v59 }
 0x21a   : > { %v1072_v60 = vpop.f32.mrf.mxu2 }
 0x21b   : > { %v3073_v60 = vld [vmem:[#allocation14 + $0x30] sm:$0xff] }
 0x21c   : > { %1135 = vmatpush.bf16.xpose.msra.mxu3 %v1074_v48  ;;  %1253 = vmatpush.bf16.msra.mxu0 %v1109_v59  ;;  %v3074_v59 = vld [vmem:[#allocation14 + $0x38] sm:$0xff] }
 0x21d   : > { %1330 = vmatpush.bf16.msra.mxu1 %v3074_v59 }
 0x221   : > { %1331 = vmatpush.bf16.msra.mxu1 %v3073_v60 }
 0x294   : > { %v1182_v0 = vpop.f32.mrf.mxu1 }
 0x295   : > { %v1183_v14 = vadd.f32 %v1182_v0, %v4154_v3 }
 0x297   : > { %v1186_v35 = vsel %vm1091_vm9, %v1183_v14, -inf }
 0x29a   : > { %v1087_v4 = vpop.f32.mrf.mxu3 }
 0x29b   : > { %v1088_v5 = vadd.f32 %v1087_v4, %v4154_v3 }
 0x29c   : > { %v1184_v6 = vpop.f32.mrf.mxu1 }
 0x29d   : > { %v1092_v7 = vsel %vm1091_vm9, %v1088_v5, -inf }
 0x29e   : > { %1093 = vmax.xlane.f32.xlu1 %v1092_v7 }
 0x2a2   : > { %v1089_v8 = vpop.f32.mrf.mxu3 }
 0x311   : > { %v1094_v9 = vpop.xlane.xlu1 %1093 }
 0x312   : > { %v1095_v10 = vsub.f32 %v1088_v5, %v1094_v9 }
 0x314   : > { %v1096_v12 = vmul.f32 1.442695, %v1095_v10  ;;  %v3072_v10 = vld [vmem:[#allocation14 + $0x28] sm:$0xff] }
 0x315   : > { %1332 = vmatpush.bf16.msra.mxu1 %v3072_v10 }
 0x316   : > { %3315 = vpow2.f32 %v1096_v12  ;;  %v3071_v12 = vld [vmem:[#allocation14 + $0x20] sm:$0xff] }
 0x319   : > { %1333 = vmatpush.bf16.msra.mxu1 %v3071_v12  ;;  %v3089_v12 = vld [vmem:[#allocation17 + $0x30] sm:$0xff] }
 0x31c   : > { %v3316_v13 = vpop.eup %3315 }
 0x31d   : > { %v1098_v16 = vsel %vm1091_vm9, %v3316_v13, 0.0 }
 0x31e   : > { %1099 = vadd.xlane.f32.xlu1 %v1098_v16  ;;  %v3069_v16 = vld [vmem:[#allocation14 + $0x10] sm:$0xff] }
 0x391   : > { %v1100_v18 = vpop.xlane.xlu1 %1099 }
 0x392   : > { %3317 = vrcp.f32 %v1100_v18  ;;  %v3068_v18 = vld [vmem:[#allocation14 + $0x8] sm:$0xff] }
 0x398   : > { %v3318_v19 = vpop.eup %3317 }
 0x399   : > { %v1102_v20 = vmul.f32 %v3318_v19, %v3316_v13  ;;  %v3070_v13 = vld [vmem:[#allocation14 + $0x18] sm:$0xff]  ;;  %v3067_v19 = vld [vmem:[#allocation14] sm:$0xff] }
 0x39a   : > { %1334 = vmatpush.bf16.msra.mxu1 %v3070_v13  ;;  %v3088_v13 = vld [vmem:[#allocation17 + $0x28] sm:$0xff] }
 0x39b   : > { %v1103_v21 = vpack.c.bf16 %v1102_v20, %v1102_v20 }
 0x39d   : > { %2704 = vmatmul.msk.bf16.vlgmr.msrb.gmra.mxu3 %vm1091_vm9, %v1103_v21 }
 0x39e   : > { %1225 = vmatpush.bf16.xpose.msrb.mxu3 %v1074_v48  ;;  %1335 = vmatpush.bf16.msra.mxu1 %v3069_v16  ;;  %v3087_v16 = vld [vmem:[#allocation17 + $0x20] sm:$0xff] }
 0x3a2   : > { %1336 = vmatpush.bf16.msra.mxu1 %v3068_v18  ;;  %v3086_v18 = vld [vmem:[#allocation17 + $0x18] sm:$0xff] }
 0x3a6   : > { %1337 = vmatpush.bf16.msra.mxu1 %v3067_v19  ;;  %v3085_v19 = vld [vmem:[#allocation17 + $0x10] sm:$0xff] }
 0x3ad   : > { %1136 = vmatmul.bf16.vlgmr.msra.gmra.mxu3 %v1127_v25 }
 0x3bd   : > { %1226 = vmatmul.bf16.vlgmr.msrb.gmra.mxu3 %v1217_v29 }
 0x420   : > { %v4181_v30 = vpop.f32.mrf.mxu3 }
 0x421   : > { %v1124_v25 = vmul.f32 %v4134_v40, %v4181_v30 }
 0x428   : > { %v1122_v31 = vpop.f32.mrf.mxu3 }
 0x430   : > { %v1137_v32 = vpop.f32.mrf.mxu3 }
 0x431   : > { %v1138_v33 = vadd.f32 %v1137_v32, %v4154_v3 }
 0x433   : > { %v1141_v11 = vsel %vm1091_vm9, %v1138_v33, -inf }
 0x434   : > { %1142 = vmax.xlane.f32.xlu2 %v1141_v11 }
 0x438   : > { %v1139_v34 = vpop.f32.mrf.mxu3 }
 0x43c   : > { %1187 = vmax.xlane.f32.xlu2 %v1186_v35 }
 0x440   : > { %v1227_v37 = vpop.f32.mrf.mxu3 }
 0x441   : > { %v1228_v38 = vadd.f32 %v1227_v37, %v4154_v3 }
 0x443   : > { %v1231_v39 = vsel %vm1091_vm9, %v1228_v38, -inf }
 0x444   : > { %1232 = vmax.xlane.f32.xlu0 %v1231_v39 }
 0x448   : > { %v1229_v17 = vpop.f32.mrf.mxu3 }
 0x4a7   : > { %v1143_v42 = vpop.xlane.xlu2 %1142 }
 0x4a8   : > { %v1144_v43 = vsub.f32 %v1138_v33, %v1143_v42 }
 0x4aa   : > { %v1145_v44 = vmul.f32 1.442695, %v1144_v43  ;;  %v3082_v43 = vld [vmem:[#allocation16 + $0x38] sm:$0xff] }
 0x4ab   : > { %1444 = vmatpush.bf16.msra.mxu2 %v3082_v43 }
 0x4ac   : > { %3319 = vpow2.f32 %v1145_v44 }
 0x4af   : > { %v1188_v45 = vpop.xlane.xlu2 %1187 }
 0x4b0   : > { %v1189_v48 = vsub.f32 %v1183_v14, %v1188_v45 }
 0x4b2   : > { %v3320_v49 = vpop.eup %3319  ;;  %v1190_v50 = vmul.f32 1.442695, %v1189_v48 }
 0x4b3   : > { %v1147_v51 = vsel %vm1091_vm9, %v3320_v49, 0.0 }
 0x4b4   : > { %3321 = vpow2.f32 %v1190_v50  ;;  %1148 = vadd.xlane.f32.xlu1 %v1147_v51  ;;  %v3081_v51 = vld [vmem:[#allocation16 + $0x30] sm:$0xff] }
 0x4b5   : > { %1445 = vmatpush.bf16.msra.mxu2 %v3081_v51  ;;  %v2892_v51 = vld [vmem:[#allocation11 + $0x174] sm:$0xf0] }
 0x4b7   : > { %v1233_v52 = vpop.xlane.xlu0 %1232 }
 0x4b8   : > { %v1234_v53 = vsub.f32 %v1228_v38, %v1233_v52  ;;  %v3298_v38 = vld [vmem:[%s4334_s8] ss:$0 sm:$0xff]  ;;  %v3080_v52 = vld [vmem:[#allocation16 + $0x28] sm:$0xff] }
 0x4b9   : > { %1446 = vmatpush.bf16.msra.mxu2 %v3080_v52  ;;  %v2898_v52 = vld [vmem:[#allocation11 + $0x170] sm:$0xf] }
 0x4ba   : > { %v3322_v54 = vpop.eup %3321  ;;  %v1235_v55 = vmul.f32 1.442695, %v1234_v53  ;;  %v3079_v53 = vld [vmem:[#allocation16 + $0x20] sm:$0xff] }
 0x4bb   : > { %v1192_v56 = vsel %vm1091_vm9, %v3322_v54, 0.0 }
 0x4bc   : > { %3323 = vpow2.f32 %v1235_v55  ;;  %1193 = vadd.xlane.f32.xlu2 %v1192_v56  ;;  %v3076_v55 = vld [vmem:[#allocation16 + $0x8] sm:$0xff]  ;;  %v3075_v56 = vld [vmem:[#allocation16] sm:$0xff] }
 0x4bd   : > { %1447 = vmatpush.bf16.msra.mxu2 %v3079_v53  ;;  %v3114_v53 = vld [vmem:[#allocation11 + $0x178] sm:$0xf0] }
 0x4c2   : > { %v3324_v57 = vpop.eup %3323 }
 0x4c3   : > { %v1237_v58 = vsel %vm1091_vm9, %v3324_v57, 0.0 }
 0x4c4   : > { %1238 = vadd.xlane.f32.xlu0 %v1237_v58 }
 0x527   : > { %v1149_v61 = vpop.xlane.xlu1 %1148 }
 0x528   : > { %3325 = vrcp.f32 %v1149_v61 }
 0x52e   : > { %v3326_v62 = vpop.eup %3325 }
 0x52f   : > { %v1151_v63 = vmul.f32 %v3326_v62, %v3320_v49  ;;  %v1194_v0 = vpop.xlane.xlu2 %1193 }
 0x530   : > { %3327 = vrcp.f32 %v1194_v0 }
 0x531   : > { %v1152_v1 = vpack.c.bf16 %v1151_v63, %v1151_v63 }
 0x533   : > { %2705 = vmatmul.msk.bf16.vlgmr.msrb.gmra.mxu0 %vm1091_vm9, %v1152_v1 }
 0x536   : > { %v3328_v2 = vpop.eup %3327 }
 0x537   : > { %v1196_v4 = vmul.f32 %v3328_v2, %v3322_v54  ;;  %v1239_v5 = vpop.xlane.xlu0 %1238  ;;  %v3078_v54 = vld [vmem:[#allocation16 + $0x18] sm:$0xff] }
 0x538   : > { %3329 = vrcp.f32 %v1239_v5  ;;  %1448 = vmatpush.bf16.msra.mxu2 %v3078_v54 }
 0x539   : > { %v1197_v6 = vpack.c.bf16 %v1196_v4, %v1196_v4  ;;  %v3299_v4 = vld [vmem:[%s4335_s9] ss:$0 sm:$0xff] }
 0x53b   : > { %2706 = vmatmul.msk.bf16.vlgmr.msrb.gmra.mxu2 %vm1091_vm9, %v1197_v6 }
 0x53e   : > { %v3330_v7 = vpop.eup %3329 }
 0x53f   : > { %v1241_v8 = vmul.f32 %v3330_v7, %v3324_v57  ;;  %v3090_v57 = vld [vmem:[#allocation17 + $0x38] sm:$0xff] }
 0x540   : > { %1535 = vmatpush.bf16.msra.mxu3 %v3090_v57  ;;  %v3300_v7 = vld [vmem:[%s4336_s10] ss:$0 sm:$0xff] }
 0x541   : > { %v1242_v9 = vpack.c.bf16 %v1241_v8, %v1241_v8 }
 0x543   : > { %2707 = vmatmul.msk.bf16.vlgmr.msra.gmra.mxu0 %vm1091_vm9, %v1242_v9 }
 0x544   : > { %1536 = vmatpush.bf16.msra.mxu3 %v3089_v12  ;;  %v2874_v12 = vld [vmem:[#allocation11 + $0x140] sm:$0xf] }
 0x548   : > { %1537 = vmatpush.bf16.msra.mxu3 %v3088_v13  ;;  %v3108_v13 = vld [vmem:[#allocation11 + $0x148] sm:$0xf0] }
 0x54c   : > { %1538 = vmatpush.bf16.msra.mxu3 %v3087_v16 }
 0x550   : > { %1539 = vmatpush.bf16.msra.mxu3 %v3086_v18  ;;  %v2875_v18 = vor.u32 %v3108_v13, %v2874_v12 }
 0x554   : > { %1540 = vmatpush.bf16.msra.mxu3 %v3085_v19  ;;  %v2854_v19 = vld [vmem:[#allocation11 + $0x120] sm:$0xf] }
 0x5b0   : > { %v1165_v20 = vpop.f32.mrf.mxu0 }
 0x5b1   : > { %v1169_v24 = vmul.f32 %v4163_v22, %v1165_v20  ;;  %v3084_v20 = vld [vmem:[#allocation17 + $0x8] sm:$0xff] }
 0x5b2   : > { %1541 = vmatpush.bf16.msra.mxu3 %v3084_v20  ;;  %v3104_v20 = vld [vmem:[#allocation11 + $0x128] sm:$0xf0] }
 0x5b3   : > { %v1170_v29 = vadd.f32 %v1169_v24, %v1124_v25  ;;  %v3301_v24 = vld [vmem:[%s4394_s2] ss:$0 sm:$0xff] }
 0x5b8   : > { %v1167_v21 = vpop.f32.mrf.mxu0 }
 0x5b9   : > { %v3083_v21 = vld [vmem:[#allocation17] sm:$0xff] }
 0x5ba   : > { %1542 = vmatpush.bf16.msra.mxu3 %v3083_v21  ;;  %v3103_v21 = vld [vmem:[#allocation11 + $0x124] sm:$0xf] }
 0x5be   : > { %v1210_v28 = vpop.f32.mrf.mxu2 }
 0x5bf   : > { %v1214_v31 = vmul.f32 %v4137_v41, %v1210_v28 }
 0x5c0   : > { %v1255_v32 = vpop.f32.mrf.mxu0 }
 0x5c1   : > { %v1215_v33 = vadd.f32 %v1214_v31, %v1170_v29  ;;  %v1259_v11 = vmul.f32 %v4174_v26, %v1255_v32 }
 0x5c3   : > { %v1260_v14 = vadd.f32 %v1259_v11, %v1215_v33 }
 0x5c5   : > { %v1261_v34 = vpack.c.bf16 %v1260_v14, %v1260_v14 }
 0x5c6   : > { %v1212_v35 = vpop.f32.mrf.mxu2 }
 0x5c7   : > { %1338 = vmatmul.bf16.vlgmr.msra.gmra.mxu1 %v1261_v34 }
 0x5c8   : > { %v1257_v37 = vpop.f32.mrf.mxu0 }
 0x644   : > { %v1339_v39 = vpop.f32.mrf.mxu1 }
 0x645   : > { %v1340_v17 = vadd.f32 %v3298_v38, %v1339_v39 }
 0x647   : > { %v1343_v30 = vadd.f32 %v1340_v17, %v4126_v36  ;;  %v3077_v36 = vld [vmem:[#allocation16 + $0x10] sm:$0xff]  ;;  %v3302_v17 = vld [vmem:[%s4395_s18] ss:$0 sm:$0xff] }
 0x648   : > { %1449 = vmatpush.bf16.msra.mxu2 %v3077_v36  ;;  %v2899_v36 = vor.u32 %v3114_v53, %v2898_v52  ;;  %v2818_v52 = vld [vmem:[#allocation11 + $0xd8] sm:$0xf]  ;;  %v3095_v53 = vld [vmem:[#allocation11 + $0xe0] sm:$0xf0] }
 0x649   : > { %1346 = vadd.xlane.f32.xlu1 %v1343_v30 }
 0x64c   : > { %v1341_v42 = vpop.f32.mrf.mxu1  ;;  %1450 = vmatpush.bf16.msra.mxu2 %v3076_v55 }
 0x650   : > { %1451 = vmatpush.bf16.msra.mxu2 %v3075_v56 }
 0x654   : > { %1777 = vmatpush.bf16.msrb.mxu2 %v2899_v36  ;;  %v2819_v36 = vor.u32 %v3095_v53, %v2818_v52 }
 0x6bc   : > { %v1347_v44 = vpop.xlane.xlu1 %1346 }
 0x6bd   : > { %v1348_v45 = vmul.f32 0.03125, %v1347_v44 }
 0x6bf   : > { %v1349_v48 = vsub.f32 %v1343_v30, %v1348_v45  ;;  %v2890_v45 = vld [vmem:[#allocation11 + $0x168] sm:$0xf] }
 0x6c1   : > { %v1350_v49 = vmul.f32 %v4118_v15, %v1349_v48  ;;  %v3113_v48 = vld [vmem:[#allocation11 + $0x170] sm:$0xf0] }
 0x6c3   : > { %v1351_v50 = vmul.f32 %v1350_v49, %v1350_v49 }
 0x6c5   : > { %1352 = vadd.xlane.f32.xlu2 %v1351_v50  ;;  %v2891_v50 = vor.u32 %v3113_v48, %v2890_v45  ;;  %v2832_v45 = vld [vmem:[#allocation11 + $0xfc] sm:$0xf0]  ;;  %v2838_v48 = vld [vmem:[#allocation11 + $0xf8] sm:$0xf] }
 0x6c7   : > { %1751 = vmatpush.bf16.msrb.mxu0 %v2891_v50 }
 0x738   : > { %v1353_v58 = vpop.xlane.xlu2 %1352 }
 0x739   : > { %v1354_v59 = vmul.f32 0.03125, %v1353_v58 }
 0x73b   : > { %v1355_v60 = vadd.f32 1e-12, %v1354_v59 }
 0x73d   : > { %3331 = vrsqrt.f32 %v1355_v60  ;;  %vm1362_vm0 = vweird.f32 %v1355_v60 }
 0x743   : > { %v3332_v61 = vpop.eup %3331 }
 0x744   : > { %v1357_v62 = vmul.f32 %v3332_v61, %v1355_v60  ;;  %vm1363_vm15 = vweird.f32 %v3332_v61  ;;  %v2878_v60 = vld [vmem:[#allocation11 + $0x150] sm:$0xf] }
 0x745   : > { %vm1364_vm1 = vmor %vm1362_vm0, %vm1363_vm15 }
 0x746   : > { %v1358_v63 = vmul.f32 %v3332_v61, %v1357_v62  ;;  %v3109_v62 = vld [vmem:[#allocation11 + $0x154] sm:$0xf] }
 0x748   : > { %v1359_v0 = vmul.f32 0.5, %v1358_v63 }
 0x74a   : > { %v1360_v1 = vsub.f32 1.5, %v1359_v0  ;;  %v2880_v0 = vld [vmem:[#allocation11 + $0x15c] sm:$0xf0] }
 0x74c   : > { %v1361_v2 = vmul.f32 %v3332_v61, %v1360_v1  ;;  %v2886_v1 = vld [vmem:[#allocation11 + $0x158] sm:$0xf] }
 0x74e   : > { %v1365_v5 = vsel %vm1364_vm1, %v3332_v61, %v1361_v2  ;;  %v3110_v61 = vld [vmem:[#allocation11 + $0x158] sm:$0xf0]  ;;  %v3111_v2 = vld [vmem:[#allocation11 + $0x160] sm:$0xf0] }
 0x74f   : > { %v1366_v6 = vmul.f32 %v1365_v5, %v1350_v49  ;;  %v3112_v49 = vld [vmem:[#allocation11 + $0x16c] sm:$0xf]  ;;  %v2879_v63 = vor.u32 %v3110_v61, %v2878_v60  ;;  %v2887_v5 = vor.u32 %v3111_v2, %v2886_v1  ;;  %v2806_v61 = vld [vmem:[#allocation11 + $0xc0] sm:$0xf]  ;;  %v2808_v1 = vld [vmem:[#allocation11 + $0xcc] sm:$0xf0] }
 0x750   : > { %v2895_v54 = vor.u32 %v3112_v49, %v2892_v51  ;;  %v3099_v49 = vld [vmem:[#allocation11 + $0x100] sm:$0xf0]  ;;  %v2814_v2 = vld [vmem:[#allocation11 + $0xc8] sm:$0xf] }
 0x751   : > { %v1370_v8 = vmul.f32 %v3299_v4, %v1366_v6  ;;  %v2883_v4 = vor.u32 %v3109_v62, %v2880_v0  ;;  %1752 = vmatpush.bf16.msrb.mxu0 %v2879_v63  ;;  %1778 = vmatpush.bf16.msrb.mxu2 %v2887_v5  ;;  %v2866_v6 = vld [vmem:[#allocation11 + $0x138] sm:$0xf]  ;;  %v2839_v51 = vor.u32 %v3099_v49, %v2838_v48  ;;  %v3092_v62 = vld [vmem:[#allocation11 + $0xc8] sm:$0xf0]  ;;  %v3091_v63 = vld [vmem:[#allocation11 + $0xc4] sm:$0xf] }
 0x752   : > { %1764 = vmatpush.bf16.msrb.mxu1 %v2895_v54  ;;  %v3094_v54 = vld [vmem:[#allocation11 + $0xdc] sm:$0xf]  ;;  %v2807_v0 = vor.u32 %v3092_v62, %v2806_v61  ;;  %v2811_v5 = vor.u32 %v3091_v63, %v2808_v1 }
 0x753   : > { %v1374_v9 = vadd.f32 %v3300_v7, %v1370_v8  ;;  %v3107_v7 = vld [vmem:[#allocation11 + $0x140] sm:$0xf0]  ;;  %v3106_v8 = vld [vmem:[#allocation11 + $0x13c] sm:$0xf] }
 0x755   : > { %v1375_v10 = vpack.c.bf16 %v1374_v9, %v1374_v9  ;;  %1779 = vmatpush.bf16.msrb.mxu2 %v2875_v18 }
 0x756   : > { %1765 = vmatpush.bf16.msrb.mxu1 %v2883_v4  ;;  %v3093_v4 = vld [vmem:[#allocation11 + $0xd0] sm:$0xf0] }
 0x757   : > { %1452 = vmatmul.bf16.vlgmr.msra.gmra.mxu2 %v1375_v10  ;;  %v2868_v10 = vld [vmem:[#allocation11 + $0x144] sm:$0xf0] }
 0x758   : > { %v2871_v16 = vor.u32 %v3106_v8, %v2868_v10 }
 0x75a   : > { %1766 = vmatpush.bf16.msrb.mxu1 %v2871_v16 }
 0x7da   : > { %v1453_v25 = vpop.f32.mrf.mxu2 }
 0x7db   : > { %v1454_v28 = vadd.f32 %v3301_v24, %v1453_v25  ;;  %v2855_v24 = vor.u32 %v3104_v20, %v2854_v19  ;;  %v2856_v25 = vld [vmem:[#allocation11 + $0x12c] sm:$0xf0]  ;;  %v3303_v20 = vld [vmem:[%s4396_s1] ss:$0 sm:$0xff] }
 0x7dd   : > { %v1457_v29 = vmul.f32 %v1454_v28, %v1454_v28 }
 0x7df   : > { %v1458_v31 = vmul.f32 %v1457_v29, %v1454_v28  ;;  %v3105_v29 = vld [vmem:[#allocation11 + $0x130] sm:$0xf0] }
 0x7e1   : > { %v1459_v32 = vmul.f32 0.044715, %v1458_v31  ;;  %v2859_v31 = vor.u32 %v3103_v21, %v2856_v25  ;;  %v3304_v25 = vld [vmem:[%s4397_s16] ss:$0 sm:$0xff] }
 0x7e2   : > { %v1455_v33 = vpop.f32.mrf.mxu2 }
 0x7e3   : > { %v1460_v11 = vadd.f32 %v1459_v32, %v1454_v28  ;;  %1767 = vmatpush.bf16.msrb.mxu1 %v2859_v31  ;;  %v2842_v33 = vld [vmem:[#allocation11 + $0x108] sm:$0xf] }
 0x7e5   : > { %v1461_v14 = vmul.f32 0.7978846, %v1460_v11  ;;  %v3101_v11 = vld [vmem:[#allocation11 + $0x110] sm:$0xf0] }
 0x7e7   : > { %3333 = vtanh.f32 %v1461_v14  ;;  %v3100_v14 = vld [vmem:[#allocation11 + $0x10c] sm:$0xf] }
 0x7ed   : > { %v3334_v34 = vpop.eup %3333 }
 0x7ee   : > { %v1463_v35 = vadd.f32 1.0, %v3334_v34  ;;  %v2843_v34 = vor.u32 %v3101_v11, %v2842_v33 }
 0x7f0   : > { %v1464_v37 = vmul.f32 0.5, %v1463_v35  ;;  %v2844_v35 = vld [vmem:[#allocation11 + $0x114] sm:$0xf0] }
 0x7f2   : > { %v1465_v38 = vmul.f32 %v1464_v37, %v1454_v28  ;;  %v2862_v28 = vld [vmem:[#allocation11 + $0x128] sm:$0xf]  ;;  %v2850_v37 = vld [vmem:[#allocation11 + $0x110] sm:$0xf] }
 0x7f3   : > { %v2863_v32 = vor.u32 %v3105_v29, %v2862_v28 }
 0x7f4   : > { %v1466_v39 = vpack.c.bf16 %v1465_v38, %v1465_v38  ;;  %v3102_v38 = vld [vmem:[#allocation11 + $0x118] sm:$0xf0] }
 0x7f5   : > { %1780 = vmatpush.bf16.msrb.mxu2 %v2863_v32  ;;  %v1615_v32 = vld [vmem:[#allocation13 + $0x3] sm:$0x7] }
 0x7f6   : > { %1543 = vmatmul.bf16.vlgmr.msra.gmra.mxu3 %v1466_v39  ;;  %v2847_v39 = vor.u32 %v3100_v14, %v2844_v35  ;;  %v1618_v33 = vperm.slane %v1615_v32, 1  ;;  %v1617_v11 = vperm.slane %v1615_v32, 0 }
 0x7f8   : > { %1768 = vmatpush.bf16.msrb.mxu1 %v2847_v39 }
 0x879   : > { %v1544_v30 = vpop.f32.mrf.mxu3 }
 0x87a   : > { %v1545_v42 = vadd.f32 %v3302_v17, %v1544_v30  ;;  %v2851_v17 = vor.u32 %v3102_v38, %v2850_v37  ;;  %v2830_v30 = vld [vmem:[#allocation11 + $0xf0] sm:$0xf]  ;;  %v1619_v38 = vperm.slane %v1615_v32, 2 }
 0x87c   : > { %v1548_v43 = vadd.f32 %v1545_v42, %v1374_v9  ;;  %v2867_v9 = vor.u32 %v3107_v7, %v2866_v6  ;;  %1781 = vmatpush.bf16.msrb.mxu2 %v2851_v17  ;;  %v3098_v42 = vld [vmem:[#allocation11 + $0xf8] sm:$0xf0]  ;;  %v2815_v6 = vor.u32 %v3093_v4, %v2814_v2 }
 0x87e   : > { %1551 = vadd.xlane.f32.xlu0 %v1548_v43  ;;  %1753 = vmatpush.bf16.msrb.mxu0 %v2867_v9 }
 0x880   : > { %1782 = vmatpush.bf16.msrb.mxu2 %v2839_v51 }
 0x881   : > { %v1546_v44 = vpop.f32.mrf.mxu3 }
 0x882   : > { %1754 = vmatpush.bf16.msrb.mxu0 %v2855_v24  ;;  %v2831_v44 = vor.u32 %v3098_v42, %v2830_v30 }
 0x886   : > { %1755 = vmatpush.bf16.msrb.mxu0 %v2843_v34 }
 0x88a   : > { %1756 = vmatpush.bf16.msrb.mxu0 %v2831_v44 }
 0x88e   : > { %1757 = vmatpush.bf16.msrb.mxu0 %v2819_v36 }
 0x892   : > { %1758 = vmatpush.bf16.msrb.mxu0 %v2807_v0 }
 0x8f1   : > { %v1552_v55 = vpop.xlane.xlu0 %1551 }
 0x8f2   : > { %v1553_v56 = vmul.f32 0.03125, %v1552_v55  ;;  %v2820_v55 = vld [vmem:[#allocation11 + $0xe4] sm:$0xf0] }
 0x8f4   : > { %v1554_v57 = vsub.f32 %v1548_v43, %v1553_v56  ;;  %v3097_v43 = vld [vmem:[#allocation11 + $0xf4] sm:$0xf]  ;;  %v2826_v56 = vld [vmem:[#allocation11 + $0xe0] sm:$0xf] }
 0x8f5   : > { %v2835_v50 = vor.u32 %v3097_v43, %v2832_v45 }
 0x8f6   : > { %v4218_v58 = vmul.f32 %v4118_v15, %v1554_v57  ;;  %v3096_v57 = vld [vmem:[#allocation11 + $0xe8] sm:$0xf0] }
 0x8f7   : > { %1769 = vmatpush.bf16.msrb.mxu1 %v2835_v50  ;;  %v2827_v60 = vor.u32 %v3096_v57, %v2826_v56 }
 0x8f8   : > { %v1556_v59 = vmul.f32 %v4218_v58, %v4218_v58 }
 0x8f9   : > { %1783 = vmatpush.bf16.msrb.mxu2 %v2827_v60 }
 0x8fa   : > { %1557 = vadd.xlane.f32.xlu1 %v1556_v59  ;;  %v2823_v59 = vor.u32 %v3094_v54, %v2820_v55 }
 0x8fc   : > { %1770 = vmatpush.bf16.msrb.mxu1 %v2823_v59 }
 0x8fd   : > { %1784 = vmatpush.bf16.msrb.mxu2 %v2815_v6 }
 0x900   : > { %1771 = vmatpush.bf16.msrb.mxu1 %v2811_v5 }
 0x96d   : > { %v1558_v7 = vpop.xlane.xlu1 %1557 }
 0x96e   : > { %v1559_v8 = vmul.f32 0.03125, %v1558_v7 }
 0x970   : > { %v1560_v9 = vadd.f32 1e-12, %v1559_v8 }
 0x972   : > { %3335 = vrsqrt.f32 %v1560_v9  ;;  %vm1567_vm3 = vweird.f32 %v1560_v9 }
 0x978   : > { %v3336_v10 = vpop.eup %3335 }
 0x979   : > { %v1562_v12 = vmul.f32 %v3336_v10, %v1560_v9  ;;  %vm1568_vm2 = vweird.f32 %v3336_v10 }
 0x97a   : > { %vm1569_vm4 = vmor %vm1567_vm3, %vm1568_vm2 }
 0x97b   : > { %v1563_v13 = vmul.f32 %v3336_v10, %v1562_v12 }
 0x97d   : > { %v1564_v16 = vmul.f32 0.5, %v1563_v13 }
 0x97f   : > { %v1565_v18 = vsub.f32 1.5, %v1564_v16 }
 0x981   : > { %v1566_v19 = vmul.f32 %v3336_v10, %v1565_v18 }
 0x983   : > { %v1570_v21 = vsel %vm1569_vm4, %v3336_v10, %v1566_v19 }
 0x984   : > { %v1571_v24 = vmul.f32 %v1570_v21, %v4218_v58 }
 0x986   : > { %v1575_v28 = vmul.f32 %v3303_v20, %v1571_v24 }
 0x988   : > { %v4229_v29 = vadd.f32 %v3304_v25, %v1575_v28 }
 0x98a   : > { %v1580_v31 = vpack.c.bf16 %v4229_v29, %v4229_v29 }
 0x98c   : > { %1759 = vmatmul.bf16.vlgmr.msrb.gmra.mxu0 %v1580_v31  ;;  %1772 = vmatmul.bf16.vlgmr.msrb.gmra.mxu1 %v1580_v31 }
 0x98d   : > { %1785 = vmatmul.bf16.vlgmr.msrb.gmra.mxu2 %v1580_v31 }
 0xa09   : > { %v1760_v14 = vpop.f32.mrf.mxu0  ;;  %v1773_v34 = vpop.f32.mrf.mxu1 }
 0xa0a   : > { %v1774_v35 = vadd.f32 %v1773_v34, %v1618_v33  ;;  %v1761_v58 = vadd.f32 %v1760_v14, %v1617_v11 }
 0xa0c   : > { %v1790_v37 = vpack.c.bf16 %v1774_v35, %v1774_v35  ;;  %v1792_v39 = vmul.f32 %v1761_v58, %v4142_v46  ;;  %v1885_v17 = vmul.f32 %v1761_v58, %v4145_v47  ;;  %v1840_v47 = vmul.f32 %v1761_v58, %v4166_v23 }
 0xa0d   : > { %v1930_v52 = vmul.f32 %v1761_v58, %v4177_v27 }
 0xa0e   : > { %1801 = vmatpush.bf16.xpose.msrb.mxu3 %v1790_v37  ;;  %1894 = vmatpush.bf16.xpose.msra.mxu1 %v1790_v37  ;;  %v1793_v48 = vpack.c.bf16 %v1792_v39, %v1792_v39  ;;  %v1886_v49 = vpack.c.bf16 %v1885_v17, %v1885_v17  ;;  %v1841_v51 = vpack.c.bf16 %v1840_v47, %v1840_v47  ;;  %v3121_v47 = vld [vmem:[#allocation14 + $0x70] sm:$0xff] }
 0xa0f   : > { %v1931_v53 = vpack.c.bf16 %v1930_v52, %v1930_v52  ;;  %v3118_v52 = vld [vmem:[#allocation14 + $0x58] sm:$0xff] }
 0xa10   : > { %v1786_v30 = vpop.f32.mrf.mxu2 }
 0xa11   : > { %v1787_v42 = vadd.f32 %v1786_v30, %v1619_v38  ;;  %v1762_v43 = vpop.f32.mrf.mxu0  ;;  %v1775_v44 = vpop.f32.mrf.mxu1 }
 0xa13   : > { %v1791_v45 = vpack.c.bf16 %v1787_v42, %v1787_v42 }
 0xa15   : > { %v4236_v50 = vsel %vm1107_vm8, %v1791_v45, 0  ;;  %1802 = vmatmul.bf16.vlgmr.msrb.gmra.mxu3 %v1793_v48  ;;  %1895 = vmatmul.bf16.vlgmr.msra.gmra.mxu1 %v1886_v49 }
 0xa16   : > { %1849 = vmatpush.bf16.xpose.msra.mxu3 %v1790_v37  ;;  %1832 = vmatpush.bf16.msra.mxu0 %v4236_v50 }
 0xa17   : > { %1922 = vmatpush.bf16.msra.mxu2 %v4236_v50 }
 0xa18   : > { %v1788_v46 = vpop.f32.mrf.mxu2 }
 0xa19   : > { %v3122_v46 = vld [vmem:[#allocation14 + $0x78] sm:$0xff] }
 0xa1a   : > { %1877 = vmatpush.bf16.msrb.mxu0 %v4236_v50  ;;  %2046 = vmatpush.bf16.msrb.mxu1 %v3122_v46  ;;  %v3133_v46 = vld [vmem:[#allocation17 + $0x50] sm:$0xff] }
 0xa1e   : > { %1939 = vmatpush.bf16.xpose.msrb.mxu3 %v1790_v37  ;;  %2047 = vmatpush.bf16.msrb.mxu1 %v3121_v47  ;;  %v3132_v47 = vld [vmem:[#allocation17 + $0x48] sm:$0xff] }
 0xa25   : > { %1850 = vmatmul.bf16.vlgmr.msra.gmra.mxu3 %v1841_v51  ;;  %v3120_v51 = vld [vmem:[#allocation14 + $0x68] sm:$0xff] }
 0xa26   : > { %2048 = vmatpush.bf16.msrb.mxu1 %v3120_v51  ;;  %v3131_v51 = vld [vmem:[#allocation17 + $0x40] sm:$0xff] }
 0xa35   : > { %1940 = vmatmul.bf16.vlgmr.msrb.gmra.mxu3 %v1931_v53  ;;  %v3117_v53 = vld [vmem:[#allocation14 + $0x50] sm:$0xff] }
 0xa92   : > { %v1896_v54 = vpop.f32.mrf.mxu1 }
 0xa93   : > { %v1897_v36 = vadd.f32 %v1896_v54, %v4154_v3 }
 0xa95   : > { %v1900_v55 = vsel %vm1091_vm9, %v1897_v36, -inf }
 0xa96   : > { %1901 = vmax.xlane.f32.xlu1 %v1900_v55  ;;  %v3116_v55 = vld [vmem:[#allocation14 + $0x48] sm:$0xff] }
 0xa98   : > { %v1803_v56 = vpop.f32.mrf.mxu3 }
 0xa99   : > { %v1804_v57 = vadd.f32 %v1803_v56, %v4154_v3  ;;  %v3115_v56 = vld [vmem:[#allocation14 + $0x40] sm:$0xff] }
 0xa9a   : > { %v1898_v59 = vpop.f32.mrf.mxu1 }
 0xa9b   : > { %v1807_v60 = vsel %vm1091_vm9, %v1804_v57, -inf }
 0xa9c   : > { %1808 = vmax.xlane.f32.xlu2 %v1807_v60 }
 0xaa0   : > { %v1805_v23 = vpop.f32.mrf.mxu3 }
 0xaa8   : > { %v1851_v61 = vpop.f32.mrf.mxu3 }
 0xaa9   : > { %v1852_v62 = vadd.f32 %v1851_v61, %v4154_v3 }
 0xaab   : > { %v1855_v27 = vsel %vm1091_vm9, %v1852_v62, -inf }
 0xaac   : > { %1856 = vmax.xlane.f32.xlu0 %v1855_v27 }
 0xab0   : > { %v1853_v63 = vpop.f32.mrf.mxu3 }
 0xab8   : > { %v1941_v0 = vpop.f32.mrf.mxu3 }
 0xab9   : > { %v1942_v1 = vadd.f32 %v1941_v0, %v4154_v3 }
 0xabb   : > { %v1945_v2 = vsel %vm1091_vm9, %v1942_v1, -inf }
 0xabc   : > { %1946 = vmax.xlane.f32.xlu2 %v1945_v2 }
 0xac0   : > { %v1943_v4 = vpop.f32.mrf.mxu3 }
 0xb09   : > { %v1902_v5 = vpop.xlane.xlu1 %1901 }
 0xb0a   : > { %v1903_v6 = vsub.f32 %v1897_v36, %v1902_v5 }
 0xb0c   : > { %v1904_v7 = vmul.f32 1.442695, %v1903_v6 }
 0xb0e   : > { %3337 = vpow2.f32 %v1904_v7  ;;  %v3305_v7 = vld [vmem:[%s4334_s8 + $0x1] ss:$0 sm:$0xff] }
 0xb0f   : > { %v1809_v8 = vpop.xlane.xlu2 %1808 }
 0xb10   : > { %v1810_v9 = vsub.f32 %v1804_v57, %v1809_v8 }
 0xb12   : > { %v1811_v10 = vmul.f32 1.442695, %v1810_v9 }
 0xb14   : > { %v3338_v12 = vpop.eup %3337  ;;  %3339 = vpow2.f32 %v1811_v10  ;;  %v3130_v10 = vld [vmem:[#allocation16 + $0x78] sm:$0xff] }
 0xb15   : > { %v1906_v13 = vsel %vm1091_vm9, %v3338_v12, 0.0  ;;  %2164 = vmatpush.bf16.msrb.mxu2 %v3130_v10  ;;  %v3144_v10 = vld [vmem:[#allocation19 + $0x28] sm:$0xff] }
 0xb16   : > { %1907 = vadd.xlane.f32.xlu2 %v1906_v13 }
 0xb1a   : > { %v3340_v16 = vpop.eup %3339 }
 0xb1b   : > { %v1813_v18 = vsel %vm1091_vm9, %v3340_v16, 0.0 }
 0xb1c   : > { %1814 = vadd.xlane.f32.xlu0 %v1813_v18  ;;  %v3129_v18 = vld [vmem:[#allocation16 + $0x70] sm:$0xff] }
 0xb1d   : > { %2165 = vmatpush.bf16.msrb.mxu2 %v3129_v18 }
 0xb1f   : > { %v1857_v3 = vpop.xlane.xlu0 %1856 }
 0xb20   : > { %v1858_v19 = vsub.f32 %v1852_v62, %v1857_v3  ;;  %v3128_v3 = vld [vmem:[#allocation16 + $0x68] sm:$0xff] }
 0xb21   : > { %2166 = vmatpush.bf16.msrb.mxu2 %v3128_v3 }
 0xb22   : > { %v1859_v20 = vmul.f32 1.442695, %v1858_v19  ;;  %v3127_v19 = vld [vmem:[#allocation16 + $0x60] sm:$0xff] }
 0xb24   : > { %3341 = vpow2.f32 %v1859_v20  ;;  %v3126_v20 = vld [vmem:[#allocation16 + $0x58] sm:$0xff] }
 0xb25   : > { %2167 = vmatpush.bf16.msrb.mxu2 %v3127_v19 }
 0xb29   : > { %2168 = vmatpush.bf16.msrb.mxu2 %v3126_v20 }
 0xb2a   : > { %v3342_v21 = vpop.eup %3341 }
 0xb2b   : > { %v1861_v24 = vsel %vm1091_vm9, %v3342_v21, 0.0 }
 0xb2c   : > { %1862 = vadd.xlane.f32.xlu1 %v1861_v24  ;;  %v3123_v24 = vld [vmem:[#allocation16 + $0x40] sm:$0xff] }
 0xb2f   : > { %v1947_v25 = vpop.xlane.xlu2 %1946 }
 0xb30   : > { %v1948_v28 = vsub.f32 %v1942_v1, %v1947_v25  ;;  %v3138_v25 = vld [vmem:[#allocation17 + $0x78] sm:$0xff] }
 0xb31   : > { %2257 = vmatpush.bf16.msra.mxu3 %v3138_v25 }
 0xb32   : > { %v1949_v31 = vmul.f32 1.442695, %v1948_v28 }
 0xb34   : > { %3343 = vpow2.f32 %v1949_v31 }
 0xb3a   : > { %v3344_v32 = vpop.eup %3343 }
 0xb3b   : > { %v1951_v33 = vsel %vm1091_vm9, %v3344_v32, 0.0 }
 0xb3c   : > { %1952 = vadd.xlane.f32.xlu0 %v1951_v33 }
 0xb89   : > { %v1908_v11 = vpop.xlane.xlu2 %1907 }
 0xb8a   : > { %3345 = vrcp.f32 %v1908_v11 }
 0xb8f   : > { %v1815_v14 = vpop.xlane.xlu0 %1814 }
 0xb90   : > { %v3346_v34 = vpop.eup %3345  ;;  %3347 = vrcp.f32 %v1815_v14 }
 0xb91   : > { %v1910_v35 = vmul.f32 %v3346_v34, %v3338_v12 }
 0xb93   : > { %v1911_v58 = vpack.c.bf16 %v1910_v35, %v1910_v35 }
 0xb95   : > { %2902 = vmatmul.msk.bf16.vlgmr.msra.gmra.mxu2 %vm1091_vm9, %v1911_v58 }
 0xb96   : > { %v3348_v37 = vpop.eup %3347 }
 0xb97   : > { %v1817_v38 = vmul.f32 %v3348_v37, %v3340_v16  ;;  %v3306_v37 = vld [vmem:[%s4335_s9 + $0x1] ss:$0 sm:$0xff] }
 0xb99   : > { %v1818_v39 = vpack.c.bf16 %v1817_v38, %v1817_v38 }
 0xb9b   : > { %2900 = vmatmul.msk.bf16.vlgmr.msra.gmra.mxu0 %vm1091_vm9, %v1818_v39 }
 0xb9c   : > { %1967 = vmatpush.bf16.msra.mxu0 %v4236_v50  ;;  %v3119_v50 = vld [vmem:[#allocation14 + $0x60] sm:$0xff] }
 0xb9d   : > { %2049 = vmatpush.bf16.msrb.mxu1 %v3119_v50  ;;  %v3308_v50 = vld [vmem:[%s4394_s2 + $0x1] ss:$0 sm:$0xff] }
 0xb9f   : > { %v1863_v17 = vpop.xlane.xlu1 %1862 }
 0xba0   : > { %3349 = vrcp.f32 %v1863_v17  ;;  %v3307_v17 = vld [vmem:[%s4336_s10 + $0x1] ss:$0 sm:$0xff] }
 0xba1   : > { %2050 = vmatpush.bf16.msrb.mxu1 %v3118_v52 }
 0xba5   : > { %2051 = vmatpush.bf16.msrb.mxu1 %v3117_v53 }
 0xba6   : > { %v3350_v30 = vpop.eup %3349 }
 0xba7   : > { %v1865_v42 = vmul.f32 %v3350_v30, %v3342_v21  ;;  %v3124_v21 = vld [vmem:[#allocation16 + $0x48] sm:$0xff] }
 0xba9   : > { %v1866_v43 = vpack.c.bf16 %v1865_v42, %v1865_v42  ;;  %2052 = vmatpush.bf16.msrb.mxu1 %v3116_v55 }
 0xbab   : > { %2901 = vmatmul.msk.bf16.vlgmr.msrb.gmra.mxu0 %vm1091_vm9, %v1866_v43 }
 0xbad   : > { %2053 = vmatpush.bf16.msrb.mxu1 %v3115_v56 }
 0xbaf   : > { %v1953_v44 = vpop.xlane.xlu0 %1952 }
 0xbb0   : > { %3351 = vrcp.f32 %v1953_v44  ;;  %v3137_v44 = vld [vmem:[#allocation17 + $0x70] sm:$0xff] }
 0xbb1   : > { %2258 = vmatpush.bf16.msra.mxu3 %v3137_v44 }
 0xbb6   : > { %v3352_v45 = vpop.eup %3351 }
 0xbb7   : > { %v1955_v48 = vmul.f32 %v3352_v45, %v3344_v32  ;;  %v3136_v45 = vld [vmem:[#allocation17 + $0x68] sm:$0xff] }
 0xbb8   : > { %2259 = vmatpush.bf16.msra.mxu3 %v3136_v45 }
 0xbb9   : > { %v1956_v49 = vpack.c.bf16 %v1955_v48, %v1955_v48  ;;  %v3135_v48 = vld [vmem:[#allocation17 + $0x60] sm:$0xff] }
 0xbbb   : > { %2903 = vmatmul.msk.bf16.vlgmr.msra.gmra.mxu0 %vm1091_vm9, %v1956_v49  ;;  %v3134_v49 = vld [vmem:[#allocation17 + $0x58] sm:$0xff] }
 0xbbc   : > { %2260 = vmatpush.bf16.msra.mxu3 %v3135_v48 }
 0xbc0   : > { %2261 = vmatpush.bf16.msra.mxu3 %v3134_v49 }
 0xbc4   : > { %2262 = vmatpush.bf16.msra.mxu3 %v3133_v46 }
 0xbc8   : > { %2263 = vmatpush.bf16.msra.mxu3 %v3132_v47 }
 0xbcc   : > { %2264 = vmatpush.bf16.msra.mxu3 %v3131_v51 }
 0xc18   : > { %v1834_v54 = vpop.f32.mrf.mxu0  ;;  %v1924_v36 = vpop.f32.mrf.mxu2 }
 0xc19   : > { %v1838_v62 = vmul.f32 %v4134_v40, %v1834_v54  ;;  %v1928_v63 = vmul.f32 %v4137_v41, %v1924_v36 }
 0xc20   : > { %v1836_v57 = vpop.f32.mrf.mxu0  ;;  %v1926_v59 = vpop.f32.mrf.mxu2 }
 0xc28   : > { %v1879_v60 = vpop.f32.mrf.mxu0 }
 0xc29   : > { %v1883_v61 = vmul.f32 %v4163_v22, %v1879_v60 }
 0xc2b   : > { %v1884_v27 = vadd.f32 %v1883_v61, %v1838_v62 }
 0xc2d   : > { %v1929_v1 = vadd.f32 %v1928_v63, %v1884_v27  ;;  %v3309_v63 = vld [vmem:[%s4395_s18 + $0x1] ss:$0 sm:$0xff] }
 0xc30   : > { %v1881_v23 = vpop.f32.mrf.mxu0 }
 0xc38   : > { %v1969_v0 = vpop.f32.mrf.mxu0 }
 0xc39   : > { %v1973_v2 = vmul.f32 %v4174_v26, %v1969_v0 }
 0xc3b   : > { %v1974_v4 = vadd.f32 %v1973_v2, %v1929_v1 }
 0xc3d   : > { %v1975_v5 = vpack.c.bf16 %v1974_v4, %v1974_v4 }
 0xc3f   : > { %2054 = vmatmul.bf16.vlgmr.msrb.gmra.mxu1 %v1975_v5  ;;  %v3146_v5 = vld [vmem:[#allocation19 + $0x38] sm:$0xff] }
 0xc40   : > { %v1971_v6 = vpop.f32.mrf.mxu0  ;;  %2373 = vmatpush.bf16.msrb.mxu0 %v3146_v5 }
 0xcbc   : > { %v2055_v8 = vpop.f32.mrf.mxu1 }
 0xcbd   : > { %v2056_v9 = vadd.f32 %v3305_v7, %v2055_v8 }
 0xcbf   : > { %v2059_v22 = vadd.f32 %v2056_v9, %v4229_v29  ;;  %v3125_v29 = vld [vmem:[#allocation16 + $0x50] sm:$0xff] }
 0xcc0   : > { %2169 = vmatpush.bf16.msrb.mxu2 %v3125_v29 }
 0xcc1   : > { %2064 = vadd.xlane.f32.xlu1 %v2059_v22 }
 0xcc4   : > { %v2057_v40 = vpop.f32.mrf.mxu1  ;;  %2170 = vmatpush.bf16.msrb.mxu2 %v3124_v21 }
 0xcc5   : > { %v3145_v40 = vld [vmem:[#allocation19 + $0x30] sm:$0xff] }
 0xcc6   : > { %2374 = vmatpush.bf16.msrb.mxu0 %v3145_v40 }
 0xcc8   : > { %2171 = vmatpush.bf16.msrb.mxu2 %v3123_v24 }
 0xcca   : > { %2375 = vmatpush.bf16.msrb.mxu0 %v3144_v10 }
 0xd34   : > { %v2065_v41 = vpop.xlane.xlu1 %2064 }
 0xd35   : > { %v2066_v12 = vmul.f32 0.03125, %v2065_v41  ;;  %v3143_v41 = vld [vmem:[#allocation19 + $0x20] sm:$0xff] }
 0xd36   : > { %2376 = vmatpush.bf16.msrb.mxu0 %v3143_v41 }
 0xd37   : > { %v2067_v13 = vsub.f32 %v2059_v22, %v2066_v12  ;;  %v3142_v12 = vld [vmem:[#allocation19 + $0x18] sm:$0xff] }
 0xd39   : > { %v2068_v26 = vmul.f32 %v4118_v15, %v2067_v13  ;;  %v3141_v13 = vld [vmem:[#allocation19 + $0x10] sm:$0xff] }
 0xd3a   : > { %2377 = vmatpush.bf16.msrb.mxu0 %v3142_v12 }
 0xd3b   : > { %v2069_v16 = vmul.f32 %v2068_v26, %v2068_v26 }
 0xd3d   : > { %2070 = vadd.xlane.f32.xlu2 %v2069_v16  ;;  %v3139_v16 = vld [vmem:[#allocation19] sm:$0xff] }
 0xd3e   : > { %2378 = vmatpush.bf16.msrb.mxu0 %v3141_v13 }
 0xdb0   : > { %v2071_v28 = vpop.xlane.xlu2 %2070 }
 0xdb1   : > { %v2072_v31 = vmul.f32 0.03125, %v2071_v28  ;;  %v3310_v28 = vld [vmem:[%s4396_s1 + $0x1] ss:$0 sm:$0xff] }
 0xdb3   : > { %v2073_v32 = vadd.f32 1e-12, %v2072_v31 }
 0xdb5   : > { %3353 = vrsqrt.f32 %v2073_v32  ;;  %vm2080_vm6 = vweird.f32 %v2073_v32 }
 0xdbb   : > { %v3354_v33 = vpop.eup %3353 }
 0xdbc   : > { %v2075_v11 = vmul.f32 %v3354_v33, %v2073_v32  ;;  %vm2081_vm5 = vweird.f32 %v3354_v33 }
 0xdbd   : > { %vm2082_vm7 = vmor %vm2080_vm6, %vm2081_vm5 }
 0xdbe   : > { %v2076_v14 = vmul.f32 %v3354_v33, %v2075_v11 }
 0xdc0   : > { %v2077_v34 = vmul.f32 0.5, %v2076_v14 }
 0xdc2   : > { %v2078_v35 = vsub.f32 1.5, %v2077_v34 }
 0xdc4   : > { %v2079_v58 = vmul.f32 %v3354_v33, %v2078_v35  ;;  %v3312_v35 = vld [vmem:[%s4399_s14] ss:$0 sm:$0xff] }
 0xdc6   : > { %v2083_v38 = vsel %vm2082_vm7, %v3354_v33, %v2079_v58  ;;  %v3311_v33 = vld [vmem:[%s4397_s16 + $0x1] ss:$0 sm:$0xff] }
 0xdc7   : > { %v2084_v39 = vmul.f32 %v2083_v38, %v2068_v26  ;;  %v3140_v26 = vld [vmem:[#allocation19 + $0x8] sm:$0xff] }
 0xdc8   : > { %2379 = vmatpush.bf16.msrb.mxu0 %v3140_v26 }
 0xdc9   : > { %v2088_v30 = vmul.f32 %v3306_v37, %v2084_v39 }
 0xdcb   : > { %v2092_v42 = vadd.f32 %v3307_v17, %v2088_v30 }
 0xdcc   : > { %2380 = vmatpush.bf16.msrb.mxu0 %v3139_v16 }
 0xdcd   : > { %v2093_v43 = vpack.c.bf16 %v2092_v42, %v2092_v42 }
 0xdcf   : > { %2172 = vmatmul.bf16.vlgmr.msrb.gmra.mxu2 %v2093_v43 }
 0xe52   : > { %v2173_v52 = vpop.f32.mrf.mxu2 }
 0xe53   : > { %v2174_v53 = vadd.f32 %v3308_v50, %v2173_v52 }
 0xe55   : > { %v2177_v54 = vmul.f32 %v2174_v53, %v2174_v53 }
 0xe57   : > { %v2178_v36 = vmul.f32 %v2177_v54, %v2174_v53 }
 0xe59   : > { %v2179_v55 = vmul.f32 0.044715, %v2178_v36 }
 0xe5a   : > { %v2175_v56 = vpop.f32.mrf.mxu2 }
 0xe5b   : > { %v2180_v57 = vadd.f32 %v2179_v55, %v2174_v53 }
 0xe5d   : > { %v2181_v59 = vmul.f32 0.7978846, %v2180_v57 }
 0xe5f   : > { %3355 = vtanh.f32 %v2181_v59 }
 0xe65   : > { %v3356_v60 = vpop.eup %3355 }
 0xe66   : > { %v2183_v23 = vadd.f32 1.0, %v3356_v60 }
 0xe68   : > { %v2184_v61 = vmul.f32 0.5, %v2183_v23 }
 0xe6a   : > { %v2185_v62 = vmul.f32 %v2184_v61, %v2174_v53 }
 0xe6c   : > { %v2186_v27 = vpack.c.bf16 %v2185_v62, %v2185_v62 }
 0xe6e   : > { %2265 = vmatmul.bf16.vlgmr.msra.gmra.mxu3 %v2186_v27 }
 0xef1   : > { %v2266_v0 = vpop.f32.mrf.mxu3 }
 0xef2   : > { %v2267_v1 = vadd.f32 %v3309_v63, %v2266_v0 }
 0xef4   : > { %v2270_v2 = vadd.f32 %v2267_v1, %v2092_v42 }
 0xef6   : > { %2275 = vadd.xlane.f32.xlu0 %v2270_v2 }
 0xef9   : > { %v2268_v4 = vpop.f32.mrf.mxu3 }
 0xf69   : > { %v2276_v6 = vpop.xlane.xlu0 %2275 }
 0xf6a   : > { %v2277_v7 = vmul.f32 0.03125, %v2276_v6 }
 0xf6c   : > { %v2278_v8 = vsub.f32 %v2270_v2, %v2277_v7 }
 0xf6e   : > { %v2279_v9 = vmul.f32 %v4118_v15, %v2278_v8 }
 0xf70   : > { %v2280_v22 = vmul.f32 %v2279_v9, %v2279_v9 }
 0xf72   : > { %2281 = vadd.xlane.f32.xlu1 %v2280_v22 }
 0xfe5   : > { %v2282_v18 = vpop.xlane.xlu1 %2281 }
 0xfe6   : > { %v2283_v3 = vmul.f32 0.03125, %v2282_v18 }
 0xfe8   : > { %v2284_v19 = vadd.f32 1e-12, %v2283_v3 }
 0xfea   : > { %3357 = vrsqrt.f32 %v2284_v19  ;;  %vm2291_vm9 = vweird.f32 %v2284_v19 }
 0xff0   : > { %v3358_v15 = vpop.eup %3357 }
 0xff1   : > { %v2286_v20 = vmul.f32 %v3358_v15, %v2284_v19  ;;  %vm2292_vm8 = vweird.f32 %v3358_v15 }
 0xff2   : > { %vm2293_vm10 = vmor %vm2291_vm9, %vm2292_vm8 }
 0xff3   : > { %v2287_v29 = vmul.f32 %v3358_v15, %v2286_v20 }
 0xff5   : > { %v2288_v21 = vmul.f32 0.5, %v2287_v29 }
 0xff7   : > { %v2289_v24 = vsub.f32 1.5, %v2288_v21 }
 0xff9   : > { %v2290_v25 = vmul.f32 %v3358_v15, %v2289_v24 }
 0xffb   : > { %v2294_v31 = vsel %vm2293_vm10, %v3358_v15, %v2290_v25 }
 0xffc   : > { %v2295_v32 = vmul.f32 %v2294_v31, %v2279_v9 }
 0xffe   : > { %v2299_v11 = vmul.f32 %v3310_v28, %v2295_v32 }
0x1000   : > { %v2303_v14 = vadd.f32 %v3311_v33, %v2299_v11 }
0x1002   : > { %v2304_v34 = vpack.c.bf16 %v2303_v14, %v2303_v14 }
0x1004   : > { %2381 = vmatmul.bf16.vlgmr.msrb.gmra.mxu0 %v2304_v34 }
0x1081   : > { %v2382_v58 = vpop.f32.mrf.mxu0 }
0x1082   : > { %v2383_v37 = vadd.f32 %v3312_v35, %v2382_v58 }
0x1084   : > { %2386 = vst [vmem:[%s796_s29] sm:$0xff] %v2383_v37 }
0x1085   : > { %3716 = shalt.err (!%p3713_p10)
}
0x1086   : > { %3187 = dma.vmem_to_hbm [thread:$0]  (%p4019_p0), %s2401_s19, 128, %s2403_s4, %s2388_s26  }
0x1089   : > { %v2384_v38 = vpop.f32.mrf.mxu0 }
0x108a PF: > { %s2414_s6 = sand.u32 1, %s3767_s0   ;;  %p4400_p11 = scmp.ge.s32.totalorder %s3779_s21, 2 }
0x108b   : > { %s2415_s7 = scalar_lea.sflag [#allocation4], %s2414_s6 }
0x108c   : > { %p3225_p4 = pnand %p4400_p11, %p4027_p6 }
0x108e   : > { %p3226_p12 = pneg %p3225_p4 }
0x1090   : > { %3762 = dma.done.wait (%p3226_p12), %s2415_s7, 128  }
0x1091   : > { %3764 = vsyncadd (%p3226_p12), %s2415_s7, 4294967168  ;;  %s4401_s21 = sld [smem:[#allocation30_spill]]  ;;  %s4404_s0 = smov %s3771_s30 }
0x1092   : > { %s4402_s11 = sld [smem:[#allocation29_spill]] }
0x1093   : > { %s4403_s20 = sld [smem:[#allocation31_spill]] }
0x1097   : > { %p39_p2 = scmp.ge.s32.totalorder %s4401_s21, 4  }
0x1098   : > { %s4405_s30 = smov %s4402_s11 }
0x1099   :  { %41 = sbr.rel (!%p39_p2) target bundleno = 29 (0x1d), region = 202 }
0x109e   :  { %2421 = vsyncpa [#allocation3], 1 }
0x109f   :  { %2423 = vsyncpa [#allocation3 + $0x1], 1 }
0x10a0   :  { %2424 = vsyncpa [#allocation6], 1 }
0x10a1   :  { %2426 = vsyncpa [#allocation6 + $0x1], 1 }
0x10a2   :  { %2427 = vsyncpa [#allocation9], 1 }
0x10a3   :  { %2428 = vsyncpa [#allocation12], 1 }
0x10a4   :  { %2429 = vsyncpa [#allocation15], 1 }
0x10a5   :  { %2430 = vsyncpa [#allocation18], 1 }
0x10a6   :  { %2431 = vsyncpa [#allocation4], 1 }
0x10a7   :  { %2433 = vsyncpa [#allocation4 + $0x1], 1 }

</bundles_post_ra>
